<compile_context>
chip_gen: v6e
topology: v6e:2x2x1
jax: 0.10.0
libtpu: 0.0.40
codegen_flags: <defaults>
</compile_context>

<pallas_src>
import jax
import jax.numpy as jnp
from jax.experimental import pallas as pl
from jax.experimental.pallas import tpu as pltpu

# ----------------------------- config (small, synthetic) ---------------------
HIDDEN = 64                      # config.hidden_size
NUM_HEADS = 4                    # config.num_attention_heads
NUM_KV_HEADS = 2                 # config.multi_query_group_num
HEAD_DIM = HIDDEN // NUM_HEADS   # 16  (kv_channels == head_dim)
GROUP = NUM_HEADS // NUM_KV_HEADS
FFN = 128                        # config.ffn_hidden_size
NUM_LAYERS = 2                   # config.num_layers (single PP stage)
SEQ = 8                          # number of tokens
EPS = 1e-5                       # config.layernorm_epsilon
ROPE_THETA = 10000.0
ROTARY_DIM = HEAD_DIM // 2       # ChatGLM partial rotary
Q_SIZE = NUM_HEADS * HEAD_DIM
KV_SIZE = NUM_KV_HEADS * HEAD_DIM
QKV_SIZE = Q_SIZE + 2 * KV_SIZE
SCALING = HEAD_DIM ** -0.5
PARAM_DTYPE = jnp.bfloat16       # MXU-native operand dtype
ACT_DTYPE = jnp.bfloat16


# ----------------------------- in-kernel helpers ------------------------------
def _rms(x, w):
    # x: [T, H] f32, w: [1, H] f32
    var = jnp.mean(x * x, axis=-1, keepdims=True)
    return x * jax.lax.rsqrt(var + EPS) * w


# ----------------------------- fused GLM stack kernel --------------------------
def _glm_stack_kernel(
    x_ref, cs_q_ref, sn_q_ref, cs_k_ref, sn_k_ref, swap_q_ref, swap_k_ref,
    ln1_ref, qkv_w_ref, qkv_b_ref, dense_w_ref, ln2_ref,
    w_gate_ref, w_up_ref, w_down_ref, final_ln_ref,
    o_ref, h_scratch,
):
    layer = pl.program_id(0)

    @pl.when(layer == 0)
    def _():
        h_scratch[...] = x_ref[...].astype(jnp.float32)

    h = h_scratch[...]                                       # [T, H] f32 residual

    # ---- input_layernorm ----
    ln1 = _rms(h, ln1_ref[0].astype(jnp.float32))

    # ---- fused QKV projection (+ qkv bias) ----
    qkv = jnp.dot(ln1.astype(ACT_DTYPE), qkv_w_ref[0],
                  preferred_element_type=jnp.float32)
    qkv = qkv + qkv_b_ref[0].astype(jnp.float32)             # [T, QKV_SIZE]
    q = qkv[:, :Q_SIZE]
    k = qkv[:, Q_SIZE:Q_SIZE + KV_SIZE]
    v = qkv[:, Q_SIZE + KV_SIZE:]

    # ---- partial interleaved rotary, fully lane-parallel ----
    # pairwise (even<->odd) lane swap done as a tiny MXU matmul against a
    # constant permutation matrix; pass-through lanes have cos=1, sin=0.
    q_sw = jnp.dot(q, swap_q_ref[...], preferred_element_type=jnp.float32)
    k_sw = jnp.dot(k, swap_k_ref[...], preferred_element_type=jnp.float32)
    q = q * cs_q_ref[...] + q_sw * sn_q_ref[...]
    k = k * cs_k_ref[...] + k_sw * sn_k_ref[...]

    # ---- causal GQA attention, all heads resident in VMEM ----
    T = q.shape[0]
    row = jax.lax.broadcasted_iota(jnp.int32, (T, T), 0)
    col = jax.lax.broadcasted_iota(jnp.int32, (T, T), 1)
    causal = col <= row
    head_outs = []
    for hh in range(NUM_HEADS):                 # static unroll (NUM_HEADS small)
        qo = hh * HEAD_DIM
        ko = (hh // GROUP) * HEAD_DIM           # GQA: shared K/V per group
        q_h = q[:, qo:qo + HEAD_DIM] * SCALING
        k_h = k[:, ko:ko + HEAD_DIM]
        v_h = v[:, ko:ko + HEAD_DIM]
        s = jnp.dot(q_h, k_h.T, preferred_element_type=jnp.float32)   # [T, T]
        s = jnp.where(causal, s, -1e30)
        m = jnp.max(s, axis=-1, keepdims=True)
        p = jnp.exp(s - m)
        denom = jnp.sum(p, axis=-1, keepdims=True)
        o_h = jnp.dot(p, v_h, preferred_element_type=jnp.float32)
        head_outs.append(o_h * pl.reciprocal(denom, approx=True))
    attn = jnp.concatenate(head_outs, axis=-1)                # [T, Q_SIZE] lane-dense

    # ---- attention output projection + residual (post-LN residual = hidden) ----
    attn_out = jnp.dot(attn.astype(ACT_DTYPE), dense_w_ref[0],
                       preferred_element_type=jnp.float32)
    h_attn = h + attn_out

    # ---- post_attention_layernorm + fused MLP (SiluAndMul) + residual ----
    ln2 = _rms(h_attn, ln2_ref[0].astype(jnp.float32)).astype(ACT_DTYPE)
    gate = jnp.dot(ln2, w_gate_ref[0], preferred_element_type=jnp.float32)
    up = jnp.dot(ln2, w_up_ref[0], preferred_element_type=jnp.float32)
    act = gate * jax.nn.sigmoid(gate) * up                    # SiLU(gate) * up, f32
    mlp_out = jnp.dot(act.astype(ACT_DTYPE), w_down_ref[0],
                      preferred_element_type=jnp.float32)
    h_new = h_attn + mlp_out
    h_scratch[...] = h_new

    # ---- output: final RMSNorm on the last layer (last PP stage) ----
    @pl.when(layer == NUM_LAYERS - 1)
    def _():
        o_ref[...] = _rms(h_new, final_ln_ref[...].astype(jnp.float32)
                          ).astype(o_ref.dtype)

    @pl.when(layer < NUM_LAYERS - 1)
    def _():
        o_ref[...] = h_new.astype(o_ref.dtype)


# ----------------------------- rotary tables (glue, computed once) ------------
def _rope_tables(positions):
    pos = positions.astype(jnp.float32)
    inv_freq = 1.0 / (ROPE_THETA ** (
        jnp.arange(0, ROTARY_DIM, 2, dtype=jnp.float32) / ROTARY_DIM))
    freqs = pos[:, None] * inv_freq[None, :]                  # [T, ROTARY_DIM//2]
    cos = jnp.cos(freqs)
    sin = jnp.sin(freqs)
    # interleaved convention: lanes (2i, 2i+1) share frequency i;
    # out[2i] = x1*cos - x2*sin,  out[2i+1] = x2*cos + x1*sin
    cos2 = jnp.repeat(cos, 2, axis=-1)                        # [T, ROTARY_DIM]
    sign = jnp.tile(jnp.array([-1.0, 1.0], jnp.float32), ROTARY_DIM // 2)
    sin2 = jnp.repeat(sin, 2, axis=-1) * sign[None, :]
    T = pos.shape[0]
    ones = jnp.ones((T, HEAD_DIM - ROTARY_DIM), jnp.float32)
    zeros = jnp.zeros((T, HEAD_DIM - ROTARY_DIM), jnp.float32)
    cs_head = jnp.concatenate([cos2, ones], axis=-1)          # [T, HEAD_DIM]
    sn_head = jnp.concatenate([sin2, zeros], axis=-1)
    cs_q = jnp.tile(cs_head, (1, NUM_HEADS))
    sn_q = jnp.tile(sn_head, (1, NUM_HEADS))
    cs_k = jnp.tile(cs_head, (1, NUM_KV_HEADS))
    sn_k = jnp.tile(sn_head, (1, NUM_KV_HEADS))
    return cs_q, sn_q, cs_k, sn_k


def _pair_swap(n):
    # permutation matrix: (x @ P)[:, j] = x[:, j ^ 1]  (even<->odd lane swap)
    idx = jnp.arange(n)
    return (idx[:, None] == (idx[None, :] ^ 1)).astype(jnp.float32)


# ----------------------------- GLMTransformer wrapper --------------------------
def glm_transformer(hidden_states, positions, params):
    T, H = hidden_states.shape
    cs_q, sn_q, cs_k, sn_k = _rope_tables(positions)
    swap_q = _pair_swap(Q_SIZE)
    swap_k = _pair_swap(KV_SIZE)

    def full2d(shape):
        return pl.BlockSpec(shape, lambda l: (0, 0))

    def per_layer(shape):
        return pl.BlockSpec((1,) + shape, lambda l: (l, 0, 0))

    return pl.pallas_call(
        _glm_stack_kernel,
        grid=(NUM_LAYERS,),
        in_specs=[
            full2d((T, H)),                 # x (initial hidden states)
            full2d((T, Q_SIZE)),            # rotary cos (q slab)
            full2d((T, Q_SIZE)),            # rotary signed sin (q slab)
            full2d((T, KV_SIZE)),           # rotary cos (k slab)
            full2d((T, KV_SIZE)),           # rotary signed sin (k slab)
            full2d((Q_SIZE, Q_SIZE)),       # pair-swap permutation (q)
            full2d((KV_SIZE, KV_SIZE)),     # pair-swap permutation (k)
            per_layer((1, H)),              # input_layernorm weight
            per_layer((H, QKV_SIZE)),       # query_key_value weight
            per_layer((1, QKV_SIZE)),       # query_key_value bias (add_qkv_bias)
            per_layer((Q_SIZE, H)),         # dense weight (no bias)
            per_layer((1, H)),              # post_attention_layernorm weight
            per_layer((H, FFN)),            # dense_h_to_4h gate half
            per_layer((H, FFN)),            # dense_h_to_4h up half
            per_layer((FFN, H)),            # dense_4h_to_h
            full2d((1, H)),                 # final RMSNorm weight
        ],
        out_specs=pl.BlockSpec((T, H), lambda l: (0, 0)),
        out_shape=jax.ShapeDtypeStruct((T, H), ACT_DTYPE),
        scratch_shapes=[pltpu.VMEM((T, H), jnp.float32)],      # residual carry
        compiler_params=pltpu.CompilerParams(
            dimension_semantics=("arbitrary",)),               # layers are sequential
    )(hidden_states, cs_q, sn_q, cs_k, sn_k, swap_q, swap_k,
      params["ln1_w"], params["qkv_w"], params["qkv_b"], params["dense_w"],
      params["ln2_w"], params["w_gate"], params["w_up"], params["w_down"],
      params["final_ln_w"])


# ----------------------------- deterministic params ----------------------------
def init_params(key):
    keys = jax.random.split(key, 6)

    def w(k, shape, scale=0.02):
        return (scale * jax.random.normal(
            k, (NUM_LAYERS,) + shape, jnp.float32)).astype(PARAM_DTYPE)

    return dict(
        ln1_w=jnp.ones((NUM_LAYERS, 1, HIDDEN), PARAM_DTYPE),
        qkv_w=w(keys[0], (HIDDEN, QKV_SIZE)),      # [in, out] layout
        qkv_b=w(keys[1], (1, QKV_SIZE)),
        dense_w=w(keys[2], (Q_SIZE, HIDDEN)),
        ln2_w=jnp.ones((NUM_LAYERS, 1, HIDDEN), PARAM_DTYPE),
        w_gate=w(keys[3], (HIDDEN, FFN)),          # dense_h_to_4h, gate half
        w_up=w(keys[4], (HIDDEN, FFN)),            # dense_h_to_4h, up half
        w_down=w(keys[5], (FFN, HIDDEN)),          # dense_4h_to_h
        final_ln_w=jnp.ones((1, HIDDEN), PARAM_DTYPE),
    )


# ----------------------------- main --------------------------------------------
if __name__ == "__main__":
    key = jax.random.PRNGKey(0)
    pkey, xkey = jax.random.split(key)
    params = init_params(pkey)
    hidden_states = jax.random.normal(
        xkey, (SEQ, HIDDEN), jnp.float32).astype(ACT_DTYPE)
    positions = jnp.arange(SEQ, dtype=jnp.int32)

    out = jax.jit(glm_transformer)(hidden_states, positions, params)
    out = jax.block_until_ready(out)

    assert out.shape == (SEQ, HIDDEN), out.shape
    assert bool(jnp.all(jnp.isfinite(out.astype(jnp.float32))))
    print("KERNEL_OK")
</pallas_src>

<mosaic_0001>
module attributes {stable_mosaic.version = 11 : i64} {
  func.func @_glm_stack_kernel(%arg0: i32, %arg1: memref<8x64xbf16, #tpu.memory_space<vmem>>, %arg2: memref<8x64xf32, #tpu.memory_space<vmem>>, %arg3: memref<8x64xf32, #tpu.memory_space<vmem>>, %arg4: memref<8x32xf32, #tpu.memory_space<vmem>>, %arg5: memref<8x32xf32, #tpu.memory_space<vmem>>, %arg6: memref<64x64xf32, #tpu.memory_space<vmem>>, %arg7: memref<32x32xf32, #tpu.memory_space<vmem>>, %arg8: memref<1x1x64xbf16, #tpu.memory_space<vmem>>, %arg9: memref<1x64x128xbf16, #tpu.memory_space<vmem>>, %arg10: memref<1x1x128xbf16, #tpu.memory_space<vmem>>, %arg11: memref<1x64x64xbf16, #tpu.memory_space<vmem>>, %arg12: memref<1x1x64xbf16, #tpu.memory_space<vmem>>, %arg13: memref<1x64x128xbf16, #tpu.memory_space<vmem>>, %arg14: memref<1x64x128xbf16, #tpu.memory_space<vmem>>, %arg15: memref<1x128x64xbf16, #tpu.memory_space<vmem>>, %arg16: memref<1x64xbf16, #tpu.memory_space<vmem>>, %arg17: memref<8x64xbf16, #tpu.memory_space<vmem>>, %arg18: memref<8x64xf32, #tpu.memory_space<vmem>>) attributes {dimension_semantics = [#tpu.dimension_semantics<arbitrary>], iteration_bounds = array<i64: 2>, scalar_prefetch = 0 : i64, scratch_operands = 1 : i64, tpu.core_type = #tpu.core_type<tc>, window_params = [{pipeline_mode = #tpu.pipeline_mode<synchronous>, transform_indices = @transform_0, window_bounds = array<i64: 8, 64>}, {pipeline_mode = #tpu.pipeline_mode<synchronous>, transform_indices = @transform_1, window_bounds = array<i64: 8, 64>}, {pipeline_mode = #tpu.pipeline_mode<synchronous>, transform_indices = @transform_2, window_bounds = array<i64: 8, 64>}, {pipeline_mode = #tpu.pipeline_mode<synchronous>, transform_indices = @transform_3, window_bounds = array<i64: 8, 32>}, {pipeline_mode = #tpu.pipeline_mode<synchronous>, transform_indices = @transform_4, window_bounds = array<i64: 8, 32>}, {pipeline_mode = #tpu.pipeline_mode<synchronous>, transform_indices = @transform_5, window_bounds = array<i64: 64, 64>}, {pipeline_mode = #tpu.pipeline_mode<synchronous>, transform_indices = @transform_6, window_bounds = array<i64: 32, 32>}, {transform_indices = @transform_7, window_bounds = array<i64: 1, 1, 64>}, {transform_indices = @transform_8, window_bounds = array<i64: 1, 64, 128>}, {transform_indices = @transform_9, window_bounds = array<i64: 1, 1, 128>}, {transform_indices = @transform_10, window_bounds = array<i64: 1, 64, 64>}, {transform_indices = @transform_11, window_bounds = array<i64: 1, 1, 64>}, {transform_indices = @transform_12, window_bounds = array<i64: 1, 64, 128>}, {transform_indices = @transform_13, window_bounds = array<i64: 1, 64, 128>}, {transform_indices = @transform_14, window_bounds = array<i64: 1, 128, 64>}, {pipeline_mode = #tpu.pipeline_mode<synchronous>, transform_indices = @transform_15, window_bounds = array<i64: 1, 64>}, {pipeline_mode = #tpu.pipeline_mode<synchronous>, transform_indices = @transform_16, window_bounds = array<i64: 8, 64>}]} {
    %c0_i32 = arith.constant 0 : i32
    %0 = arith.cmpi eq, %arg0, %c0_i32 : i32
    %1 = arith.extui %0 : i1 to i32
    %c0_i32_0 = arith.constant 0 : i32
    %2 = arith.cmpi ne, %1, %c0_i32_0 : i32
    scf.if %2 {
      %c0_80 = arith.constant 0 : index
      %c0_81 = arith.constant 0 : index
      %175 = vector.load %arg1[%c0_80, %c0_81] : memref<8x64xbf16, #tpu.memory_space<vmem>>, vector<8x64xbf16>
      %176 = arith.extf %175 : vector<8x64xbf16> to vector<8x64xf32>
      %c0_82 = arith.constant 0 : index
      %c0_83 = arith.constant 0 : index
      %177 = vector.load %arg18[%c0_82, %c0_83] : memref<8x64xf32, #tpu.memory_space<vmem>>, vector<8x64xf32>
      tpu.vector_store %arg18[%c0_82, %c0_83], %176 {strides = array<i32>} : memref<8x64xf32, #tpu.memory_space<vmem>>, vector<8x64xf32>,
    } else {
    }
    %c0 = arith.constant 0 : index
    %c0_1 = arith.constant 0 : index
    %3 = vector.load %arg18[%c0, %c0_1] : memref<8x64xf32, #tpu.memory_space<vmem>>, vector<8x64xf32>
    %c0_2 = arith.constant 0 : index
    %c0_3 = arith.constant 0 : index
    %c0_4 = arith.constant 0 : index
    %4 = vector.load %arg8[%c0_2, %c0_3, %c0_4] : memref<1x1x64xbf16, #tpu.memory_space<vmem>>, vector<1x1x64xbf16>
    %5 = vector.shape_cast %4 : vector<1x1x64xbf16> to vector<1x64xbf16>
    %6 = arith.extf %5 : vector<1x64xbf16> to vector<1x64xf32>
    %7 = arith.mulf %3, %3 : vector<8x64xf32>
    %cst = arith.constant dense<0.000000e+00> : vector<8xf32>
    %8 = vector.multi_reduction <add>, %7, %cst [1] : vector<8x64xf32> to vector<8xf32>
    %9 = vector.shape_cast %8 : vector<8xf32> to vector<8x1xf32>
    %cst_5 = arith.constant 6.400000e+01 : f32
    %10 = vector.broadcast %cst_5 : f32 to vector<8x1xf32>
    %11 = arith.divf %9, %10 : vector<8x1xf32>
    %cst_6 = arith.constant 9.99999974E-6 : f32
    %12 = vector.broadcast %cst_6 : f32 to vector<8x1xf32>
    %13 = arith.addf %11, %12 : vector<8x1xf32>
    %14 = math.rsqrt %13 : vector<8x1xf32>
    %15 = vector.broadcast %14 : vector<8x1xf32> to vector<8x64xf32>
    %16 = arith.mulf %3, %15 : vector<8x64xf32>
    %17 = vector.broadcast %6 : vector<1x64xf32> to vector<8x64xf32>
    %18 = arith.mulf %16, %17 : vector<8x64xf32>
    %19 = arith.truncf %18 : vector<8x64xf32> to vector<8x64xbf16>
    %c0_7 = arith.constant 0 : index
    %c0_8 = arith.constant 0 : index
    %c0_9 = arith.constant 0 : index
    %20 = vector.load %arg9[%c0_7, %c0_8, %c0_9] : memref<1x64x128xbf16, #tpu.memory_space<vmem>>, vector<1x64x128xbf16>
    %21 = vector.shape_cast %20 : vector<1x64x128xbf16> to vector<64x128xbf16>
    %cst_10 = arith.constant dense<0.000000e+00> : vector<8x128xf32>
    %22 = tpu.matmul %19, %21, %cst_10 {dimension_numbers = #tpu.dot_dimension_numbers<[1], [0], [0], [1], [0, 0, 1, 1], [], []>} : vector<8x64xbf16>, vector<64x128xbf16>, vector<8x128xf32> -> vector<8x128xf32>
    %c0_11 = arith.constant 0 : index
    %c0_12 = arith.constant 0 : index
    %c0_13 = arith.constant 0 : index
    %23 = vector.load %arg10[%c0_11, %c0_12, %c0_13] : memref<1x1x128xbf16, #tpu.memory_space<vmem>>, vector<1x1x128xbf16>
    %24 = vector.shape_cast %23 : vector<1x1x128xbf16> to vector<1x128xbf16>
    %25 = arith.extf %24 : vector<1x128xbf16> to vector<1x128xf32>
    %26 = vector.broadcast %25 : vector<1x128xf32> to vector<8x128xf32>
    %27 = arith.addf %22, %26 : vector<8x128xf32>
    %28 = vector.extract_strided_slice %27 {offsets = [0, 0], sizes = [8, 64], strides = [1, 1]} : vector<8x128xf32> to vector<8x64xf32>
    %29 = vector.extract_strided_slice %27 {offsets = [0, 64], sizes = [8, 32], strides = [1, 1]} : vector<8x128xf32> to vector<8x32xf32>
    %30 = vector.extract_strided_slice %27 {offsets = [0, 96], sizes = [8, 32], strides = [1, 1]} : vector<8x128xf32> to vector<8x32xf32>
    %c0_14 = arith.constant 0 : index
    %c0_15 = arith.constant 0 : index
    %31 = vector.load %arg6[%c0_14, %c0_15] : memref<64x64xf32, #tpu.memory_space<vmem>>, vector<64x64xf32>
    %cst_16 = arith.constant dense<0.000000e+00> : vector<8x64xf32>
    %32 = tpu.matmul %28, %31, %cst_16 {dimension_numbers = #tpu.dot_dimension_numbers<[1], [0], [0], [1], [0, 0, 1, 1], [], []>} : vector<8x64xf32>, vector<64x64xf32>, vector<8x64xf32> -> vector<8x64xf32>
    %c0_17 = arith.constant 0 : index
    %c0_18 = arith.constant 0 : index
    %33 = vector.load %arg7[%c0_17, %c0_18] : memref<32x32xf32, #tpu.memory_space<vmem>>, vector<32x32xf32>
    %cst_19 = arith.constant dense<0.000000e+00> : vector<8x32xf32>
    %34 = tpu.matmul %29, %33, %cst_19 {dimension_numbers = #tpu.dot_dimension_numbers<[1], [0], [0], [1], [0, 0, 1, 1], [], []>} : vector<8x32xf32>, vector<32x32xf32>, vector<8x32xf32> -> vector<8x32xf32>
    %c0_20 = arith.constant 0 : index
    %c0_21 = arith.constant 0 : index
    %35 = vector.load %arg2[%c0_20, %c0_21] : memref<8x64xf32, #tpu.memory_space<vmem>>, vector<8x64xf32>
    %36 = arith.mulf %28, %35 : vector<8x64xf32>
    %c0_22 = arith.constant 0 : index
    %c0_23 = arith.constant 0 : index
    %37 = vector.load %arg3[%c0_22, %c0_23] : memref<8x64xf32, #tpu.memory_space<vmem>>, vector<8x64xf32>
    %38 = arith.mulf %32, %37 : vector<8x64xf32>
    %39 = arith.addf %36, %38 : vector<8x64xf32>
    %c0_24 = arith.constant 0 : index
    %c0_25 = arith.constant 0 : index
    %40 = vector.load %arg4[%c0_24, %c0_25] : memref<8x32xf32, #tpu.memory_space<vmem>>, vector<8x32xf32>
    %41 = arith.mulf %29, %40 : vector<8x32xf32>
    %c0_26 = arith.constant 0 : index
    %c0_27 = arith.constant 0 : index
    %42 = vector.load %arg5[%c0_26, %c0_27] : memref<8x32xf32, #tpu.memory_space<vmem>>, vector<8x32xf32>
    %43 = arith.mulf %34, %42 : vector<8x32xf32>
    %44 = arith.addf %41, %43 : vector<8x32xf32>
    %45 = tpu.iota {dimensions = array<i32: 0>} : vector<8x8xi32>
    %46 = tpu.iota {dimensions = array<i32: 1>} : vector<8x8xi32>
    %47 = arith.cmpi sle, %46, %45 : vector<8x8xi32>
    %48 = vector.extract_strided_slice %39 {offsets = [0, 0], sizes = [8, 16], strides = [1, 1]} : vector<8x64xf32> to vector<8x16xf32>
    %cst_28 = arith.constant 2.500000e-01 : f32
    %49 = vector.broadcast %cst_28 : f32 to vector<8x16xf32>
    %50 = arith.mulf %48, %49 : vector<8x16xf32>
    %51 = vector.extract_strided_slice %44 {offsets = [0, 0], sizes = [8, 16], strides = [1, 1]} : vector<8x32xf32> to vector<8x16xf32>
    %52 = vector.extract_strided_slice %30 {offsets = [0, 0], sizes = [8, 16], strides = [1, 1]} : vector<8x32xf32> to vector<8x16xf32>
    %53 = tpu.transpose %51, [1, 0] : vector<8x16xf32> -> vector<16x8xf32>
    %cst_29 = arith.constant dense<0.000000e+00> : vector<8x8xf32>
    %54 = tpu.matmul %50, %53, %cst_29 {dimension_numbers = #tpu.dot_dimension_numbers<[1], [0], [0], [1], [0, 0, 1, 1], [], []>} : vector<8x16xf32>, vector<16x8xf32>, vector<8x8xf32> -> vector<8x8xf32>
    %cst_30 = arith.constant -1.000000e+30 : f32
    %55 = vector.broadcast %cst_30 : f32 to vector<8x8xf32>
    %56 = arith.select %47, %54, %55 : vector<8x8xi1>, vector<8x8xf32>
    %cst_31 = arith.constant dense<0xFF800000> : vector<8xf32>
    %57 = vector.multi_reduction <maximumf>, %56, %cst_31 [1] : vector<8x8xf32> to vector<8xf32>
    %58 = vector.shape_cast %57 : vector<8xf32> to vector<8x1xf32>
    %59 = vector.broadcast %58 : vector<8x1xf32> to vector<8x8xf32>
    %60 = arith.subf %56, %59 : vector<8x8xf32>
    %61 = math.exp %60 : vector<8x8xf32>
    %cst_32 = arith.constant dense<0.000000e+00> : vector<8xf32>
    %62 = vector.multi_reduction <add>, %61, %cst_32 [1] : vector<8x8xf32> to vector<8xf32>
    %63 = vector.shape_cast %62 : vector<8xf32> to vector<8x1xf32>
    %cst_33 = arith.constant dense<0.000000e+00> : vector<8x16xf32>
    %64 = tpu.matmul %61, %52, %cst_33 {dimension_numbers = #tpu.dot_dimension_numbers<[1], [0], [0], [1], [0, 0, 1, 1], [], []>} : vector<8x8xf32>, vector<8x16xf32>, vector<8x16xf32> -> vector<8x16xf32>
    %65 = tpu.reciprocal %63 {approx = true} : vector<8x1xf32> -> vector<8x1xf32>
    %66 = vector.broadcast %65 : vector<8x1xf32> to vector<8x16xf32>
    %67 = arith.mulf %64, %66 : vector<8x16xf32>
    %68 = vector.extract_strided_slice %39 {offsets = [0, 16], sizes = [8, 16], strides = [1, 1]} : vector<8x64xf32> to vector<8x16xf32>
    %cst_34 = arith.constant 2.500000e-01 : f32
    %69 = vector.broadcast %cst_34 : f32 to vector<8x16xf32>
    %70 = arith.mulf %68, %69 : vector<8x16xf32>
    %71 = vector.extract_strided_slice %44 {offsets = [0, 0], sizes = [8, 16], strides = [1, 1]} : vector<8x32xf32> to vector<8x16xf32>
    %72 = vector.extract_strided_slice %30 {offsets = [0, 0], sizes = [8, 16], strides = [1, 1]} : vector<8x32xf32> to vector<8x16xf32>
    %73 = tpu.transpose %71, [1, 0] : vector<8x16xf32> -> vector<16x8xf32>
    %cst_35 = arith.constant dense<0.000000e+00> : vector<8x8xf32>
    %74 = tpu.matmul %70, %73, %cst_35 {dimension_numbers = #tpu.dot_dimension_numbers<[1], [0], [0], [1], [0, 0, 1, 1], [], []>} : vector<8x16xf32>, vector<16x8xf32>, vector<8x8xf32> -> vector<8x8xf32>
    %cst_36 = arith.constant -1.000000e+30 : f32
    %75 = vector.broadcast %cst_36 : f32 to vector<8x8xf32>
    %76 = arith.select %47, %74, %75 : vector<8x8xi1>, vector<8x8xf32>
    %cst_37 = arith.constant dense<0xFF800000> : vector<8xf32>
    %77 = vector.multi_reduction <maximumf>, %76, %cst_37 [1] : vector<8x8xf32> to vector<8xf32>
    %78 = vector.shape_cast %77 : vector<8xf32> to vector<8x1xf32>
    %79 = vector.broadcast %78 : vector<8x1xf32> to vector<8x8xf32>
    %80 = arith.subf %76, %79 : vector<8x8xf32>
    %81 = math.exp %80 : vector<8x8xf32>
    %cst_38 = arith.constant dense<0.000000e+00> : vector<8xf32>
    %82 = vector.multi_reduction <add>, %81, %cst_38 [1] : vector<8x8xf32> to vector<8xf32>
    %83 = vector.shape_cast %82 : vector<8xf32> to vector<8x1xf32>
    %cst_39 = arith.constant dense<0.000000e+00> : vector<8x16xf32>
    %84 = tpu.matmul %81, %72, %cst_39 {dimension_numbers = #tpu.dot_dimension_numbers<[1], [0], [0], [1], [0, 0, 1, 1], [], []>} : vector<8x8xf32>, vector<8x16xf32>, vector<8x16xf32> -> vector<8x16xf32>
    %85 = tpu.reciprocal %83 {approx = true} : vector<8x1xf32> -> vector<8x1xf32>
    %86 = vector.broadcast %85 : vector<8x1xf32> to vector<8x16xf32>
    %87 = arith.mulf %84, %86 : vector<8x16xf32>
    %88 = vector.extract_strided_slice %39 {offsets = [0, 32], sizes = [8, 16], strides = [1, 1]} : vector<8x64xf32> to vector<8x16xf32>
    %cst_40 = arith.constant 2.500000e-01 : f32
    %89 = vector.broadcast %cst_40 : f32 to vector<8x16xf32>
    %90 = arith.mulf %88, %89 : vector<8x16xf32>
    %91 = vector.extract_strided_slice %44 {offsets = [0, 16], sizes = [8, 16], strides = [1, 1]} : vector<8x32xf32> to vector<8x16xf32>
    %92 = vector.extract_strided_slice %30 {offsets = [0, 16], sizes = [8, 16], strides = [1, 1]} : vector<8x32xf32> to vector<8x16xf32>
    %93 = tpu.transpose %91, [1, 0] : vector<8x16xf32> -> vector<16x8xf32>
    %cst_41 = arith.constant dense<0.000000e+00> : vector<8x8xf32>
    %94 = tpu.matmul %90, %93, %cst_41 {dimension_numbers = #tpu.dot_dimension_numbers<[1], [0], [0], [1], [0, 0, 1, 1], [], []>} : vector<8x16xf32>, vector<16x8xf32>, vector<8x8xf32> -> vector<8x8xf32>
    %cst_42 = arith.constant -1.000000e+30 : f32
    %95 = vector.broadcast %cst_42 : f32 to vector<8x8xf32>
    %96 = arith.select %47, %94, %95 : vector<8x8xi1>, vector<8x8xf32>
    %cst_43 = arith.constant dense<0xFF800000> : vector<8xf32>
    %97 = vector.multi_reduction <maximumf>, %96, %cst_43 [1] : vector<8x8xf32> to vector<8xf32>
    %98 = vector.shape_cast %97 : vector<8xf32> to vector<8x1xf32>
    %99 = vector.broadcast %98 : vector<8x1xf32> to vector<8x8xf32>
    %100 = arith.subf %96, %99 : vector<8x8xf32>
    %101 = math.exp %100 : vector<8x8xf32>
    %cst_44 = arith.constant dense<0.000000e+00> : vector<8xf32>
    %102 = vector.multi_reduction <add>, %101, %cst_44 [1] : vector<8x8xf32> to vector<8xf32>
    %103 = vector.shape_cast %102 : vector<8xf32> to vector<8x1xf32>
    %cst_45 = arith.constant dense<0.000000e+00> : vector<8x16xf32>
    %104 = tpu.matmul %101, %92, %cst_45 {dimension_numbers = #tpu.dot_dimension_numbers<[1], [0], [0], [1], [0, 0, 1, 1], [], []>} : vector<8x8xf32>, vector<8x16xf32>, vector<8x16xf32> -> vector<8x16xf32>
    %105 = tpu.reciprocal %103 {approx = true} : vector<8x1xf32> -> vector<8x1xf32>
    %106 = vector.broadcast %105 : vector<8x1xf32> to vector<8x16xf32>
    %107 = arith.mulf %104, %106 : vector<8x16xf32>
    %108 = vector.extract_strided_slice %39 {offsets = [0, 48], sizes = [8, 16], strides = [1, 1]} : vector<8x64xf32> to vector<8x16xf32>
    %cst_46 = arith.constant 2.500000e-01 : f32
    %109 = vector.broadcast %cst_46 : f32 to vector<8x16xf32>
    %110 = arith.mulf %108, %109 : vector<8x16xf32>
    %111 = vector.extract_strided_slice %44 {offsets = [0, 16], sizes = [8, 16], strides = [1, 1]} : vector<8x32xf32> to vector<8x16xf32>
    %112 = vector.extract_strided_slice %30 {offsets = [0, 16], sizes = [8, 16], strides = [1, 1]} : vector<8x32xf32> to vector<8x16xf32>
    %113 = tpu.transpose %111, [1, 0] : vector<8x16xf32> -> vector<16x8xf32>
    %cst_47 = arith.constant dense<0.000000e+00> : vector<8x8xf32>
    %114 = tpu.matmul %110, %113, %cst_47 {dimension_numbers = #tpu.dot_dimension_numbers<[1], [0], [0], [1], [0, 0, 1, 1], [], []>} : vector<8x16xf32>, vector<16x8xf32>, vector<8x8xf32> -> vector<8x8xf32>
    %cst_48 = arith.constant -1.000000e+30 : f32
    %115 = vector.broadcast %cst_48 : f32 to vector<8x8xf32>
    %116 = arith.select %47, %114, %115 : vector<8x8xi1>, vector<8x8xf32>
    %cst_49 = arith.constant dense<0xFF800000> : vector<8xf32>
    %117 = vector.multi_reduction <maximumf>, %116, %cst_49 [1] : vector<8x8xf32> to vector<8xf32>
    %118 = vector.shape_cast %117 : vector<8xf32> to vector<8x1xf32>
    %119 = vector.broadcast %118 : vector<8x1xf32> to vector<8x8xf32>
    %120 = arith.subf %116, %119 : vector<8x8xf32>
    %121 = math.exp %120 : vector<8x8xf32>
    %cst_50 = arith.constant dense<0.000000e+00> : vector<8xf32>
    %122 = vector.multi_reduction <add>, %121, %cst_50 [1] : vector<8x8xf32> to vector<8xf32>
    %123 = vector.shape_cast %122 : vector<8xf32> to vector<8x1xf32>
    %cst_51 = arith.constant dense<0.000000e+00> : vector<8x16xf32>
    %124 = tpu.matmul %121, %112, %cst_51 {dimension_numbers = #tpu.dot_dimension_numbers<[1], [0], [0], [1], [0, 0, 1, 1], [], []>} : vector<8x8xf32>, vector<8x16xf32>, vector<8x16xf32> -> vector<8x16xf32>
    %125 = tpu.reciprocal %123 {approx = true} : vector<8x1xf32> -> vector<8x1xf32>
    %126 = vector.broadcast %125 : vector<8x1xf32> to vector<8x16xf32>
    %127 = arith.mulf %124, %126 : vector<8x16xf32>
    %128 = tpu.concatenate %67, %87, %107, %127 in 1 : vector<8x16xf32>, vector<8x16xf32>, vector<8x16xf32>, vector<8x16xf32> -> vector<8x64xf32>
    %129 = arith.truncf %128 : vector<8x64xf32> to vector<8x64xbf16>
    %c0_52 = arith.constant 0 : index
    %c0_53 = arith.constant 0 : index
    %c0_54 = arith.constant 0 : index
    %130 = vector.load %arg11[%c0_52, %c0_53, %c0_54] : memref<1x64x64xbf16, #tpu.memory_space<vmem>>, vector<1x64x64xbf16>
    %131 = vector.shape_cast %130 : vector<1x64x64xbf16> to vector<64x64xbf16>
    %cst_55 = arith.constant dense<0.000000e+00> : vector<8x64xf32>
    %132 = tpu.matmul %129, %131, %cst_55 {dimension_numbers = #tpu.dot_dimension_numbers<[1], [0], [0], [1], [0, 0, 1, 1], [], []>} : vector<8x64xbf16>, vector<64x64xbf16>, vector<8x64xf32> -> vector<8x64xf32>
    %133 = arith.addf %3, %132 : vector<8x64xf32>
    %c0_56 = arith.constant 0 : index
    %c0_57 = arith.constant 0 : index
    %c0_58 = arith.constant 0 : index
    %134 = vector.load %arg12[%c0_56, %c0_57, %c0_58] : memref<1x1x64xbf16, #tpu.memory_space<vmem>>, vector<1x1x64xbf16>
    %135 = vector.shape_cast %134 : vector<1x1x64xbf16> to vector<1x64xbf16>
    %136 = arith.extf %135 : vector<1x64xbf16> to vector<1x64xf32>
    %137 = arith.mulf %133, %133 : vector<8x64xf32>
    %cst_59 = arith.constant dense<0.000000e+00> : vector<8xf32>
    %138 = vector.multi_reduction <add>, %137, %cst_59 [1] : vector<8x64xf32> to vector<8xf32>
    %139 = vector.shape_cast %138 : vector<8xf32> to vector<8x1xf32>
    %cst_60 = arith.constant 6.400000e+01 : f32
    %140 = vector.broadcast %cst_60 : f32 to vector<8x1xf32>
    %141 = arith.divf %139, %140 : vector<8x1xf32>
    %cst_61 = arith.constant 9.99999974E-6 : f32
    %142 = vector.broadcast %cst_61 : f32 to vector<8x1xf32>
    %143 = arith.addf %141, %142 : vector<8x1xf32>
    %144 = math.rsqrt %143 : vector<8x1xf32>
    %145 = vector.broadcast %144 : vector<8x1xf32> to vector<8x64xf32>
    %146 = arith.mulf %133, %145 : vector<8x64xf32>
    %147 = vector.broadcast %136 : vector<1x64xf32> to vector<8x64xf32>
    %148 = arith.mulf %146, %147 : vector<8x64xf32>
    %149 = arith.truncf %148 : vector<8x64xf32> to vector<8x64xbf16>
    %c0_62 = arith.constant 0 : index
    %c0_63 = arith.constant 0 : index
    %c0_64 = arith.constant 0 : index
    %150 = vector.load %arg13[%c0_62, %c0_63, %c0_64] : memref<1x64x128xbf16, #tpu.memory_space<vmem>>, vector<1x64x128xbf16>
    %151 = vector.shape_cast %150 : vector<1x64x128xbf16> to vector<64x128xbf16>
    %cst_65 = arith.constant dense<0.000000e+00> : vector<8x128xf32>
    %152 = tpu.matmul %149, %151, %cst_65 {dimension_numbers = #tpu.dot_dimension_numbers<[1], [0], [0], [1], [0, 0, 1, 1], [], []>} : vector<8x64xbf16>, vector<64x128xbf16>, vector<8x128xf32> -> vector<8x128xf32>
    %c0_66 = arith.constant 0 : index
    %c0_67 = arith.constant 0 : index
    %c0_68 = arith.constant 0 : index
    %153 = vector.load %arg14[%c0_66, %c0_67, %c0_68] : memref<1x64x128xbf16, #tpu.memory_space<vmem>>, vector<1x64x128xbf16>
    %154 = vector.shape_cast %153 : vector<1x64x128xbf16> to vector<64x128xbf16>
    %cst_69 = arith.constant dense<0.000000e+00> : vector<8x128xf32>
    %155 = tpu.matmul %149, %154, %cst_69 {dimension_numbers = #tpu.dot_dimension_numbers<[1], [0], [0], [1], [0, 0, 1, 1], [], []>} : vector<8x64xbf16>, vector<64x128xbf16>, vector<8x128xf32> -> vector<8x128xf32>
    %156 = arith.negf %152 : vector<8x128xf32>
    %157 = math.exp %156 : vector<8x128xf32>
    %cst_70 = arith.constant 1.000000e+00 : f32
    %158 = vector.broadcast %cst_70 : f32 to vector<8x128xf32>
    %159 = arith.addf %158, %157 : vector<8x128xf32>
    %160 = arith.divf %158, %159 : vector<8x128xf32>
    %161 = arith.mulf %152, %160 : vector<8x128xf32>
    %162 = arith.mulf %161, %155 : vector<8x128xf32>
    %163 = arith.truncf %162 : vector<8x128xf32> to vector<8x128xbf16>
    %c0_71 = arith.constant 0 : index
    %c0_72 = arith.constant 0 : index
    %c0_73 = arith.constant 0 : index
    %164 = vector.load %arg15[%c0_71, %c0_72, %c0_73] : memref<1x128x64xbf16, #tpu.memory_space<vmem>>, vector<1x128x64xbf16>
    %165 = vector.shape_cast %164 : vector<1x128x64xbf16> to vector<128x64xbf16>
    %cst_74 = arith.constant dense<0.000000e+00> : vector<8x64xf32>
    %166 = tpu.matmul %163, %165, %cst_74 {dimension_numbers = #tpu.dot_dimension_numbers<[1], [0], [0], [1], [0, 0, 1, 1], [], []>} : vector<8x128xbf16>, vector<128x64xbf16>, vector<8x64xf32> -> vector<8x64xf32>
    %167 = arith.addf %133, %166 : vector<8x64xf32>
    %c0_75 = arith.constant 0 : index
    %c0_76 = arith.constant 0 : index
    %168 = vector.load %arg18[%c0_75, %c0_76] : memref<8x64xf32, #tpu.memory_space<vmem>>, vector<8x64xf32>
    tpu.vector_store %arg18[%c0_75, %c0_76], %167 {strides = array<i32>} : memref<8x64xf32, #tpu.memory_space<vmem>>, vector<8x64xf32>,
    %c1_i32 = arith.constant 1 : i32
    %169 = arith.cmpi eq, %arg0, %c1_i32 : i32
    %170 = arith.extui %169 : i1 to i32
    %c0_i32_77 = arith.constant 0 : i32
    %171 = arith.cmpi ne, %170, %c0_i32_77 : i32
    scf.if %171 {
      %c0_80 = arith.constant 0 : index
      %c0_81 = arith.constant 0 : index
      %175 = vector.load %arg16[%c0_80, %c0_81] : memref<1x64xbf16, #tpu.memory_space<vmem>>, vector<1x64xbf16>
      %176 = arith.extf %175 : vector<1x64xbf16> to vector<1x64xf32>
      %177 = arith.mulf %167, %167 : vector<8x64xf32>
      %cst_82 = arith.constant dense<0.000000e+00> : vector<8xf32>
      %178 = vector.multi_reduction <add>, %177, %cst_82 [1] : vector<8x64xf32> to vector<8xf32>
      %179 = vector.shape_cast %178 : vector<8xf32> to vector<8x1xf32>
      %cst_83 = arith.constant 6.400000e+01 : f32
      %180 = vector.broadcast %cst_83 : f32 to vector<8x1xf32>
      %181 = arith.divf %179, %180 : vector<8x1xf32>
      %cst_84 = arith.constant 9.99999974E-6 : f32
      %182 = vector.broadcast %cst_84 : f32 to vector<8x1xf32>
      %183 = arith.addf %181, %182 : vector<8x1xf32>
      %184 = math.rsqrt %183 : vector<8x1xf32>
      %185 = vector.broadcast %184 : vector<8x1xf32> to vector<8x64xf32>
      %186 = arith.mulf %167, %185 : vector<8x64xf32>
      %187 = vector.broadcast %176 : vector<1x64xf32> to vector<8x64xf32>
      %188 = arith.mulf %186, %187 : vector<8x64xf32>
      %189 = arith.truncf %188 : vector<8x64xf32> to vector<8x64xbf16>
      %c0_85 = arith.constant 0 : index
      %c0_86 = arith.constant 0 : index
      %190 = vector.load %arg17[%c0_85, %c0_86] : memref<8x64xbf16, #tpu.memory_space<vmem>>, vector<8x64xbf16>
      tpu.vector_store %arg17[%c0_85, %c0_86], %189 {strides = array<i32>} : memref<8x64xbf16, #tpu.memory_space<vmem>>, vector<8x64xbf16>,
    } else {
    }
    %c1_i32_78 = arith.constant 1 : i32
    %172 = arith.cmpi slt, %arg0, %c1_i32_78 : i32
    %173 = arith.extui %172 : i1 to i32
    %c0_i32_79 = arith.constant 0 : i32
    %174 = arith.cmpi ne, %173, %c0_i32_79 : i32
    scf.if %174 {
      %175 = arith.truncf %167 : vector<8x64xf32> to vector<8x64xbf16>
      %c0_80 = arith.constant 0 : index
      %c0_81 = arith.constant 0 : index
      %176 = vector.load %arg17[%c0_80, %c0_81] : memref<8x64xbf16, #tpu.memory_space<vmem>>, vector<8x64xbf16>
      tpu.vector_store %arg17[%c0_80, %c0_81], %175 {strides = array<i32>} : memref<8x64xbf16, #tpu.memory_space<vmem>>, vector<8x64xbf16>,
    } else {
    }
    return
  }
  func.func @transform_0(%arg0: i32) -> (i32, i32) {
    %c0_i32 = arith.constant 0 : i32
    %c0_i32_0 = arith.constant 0 : i32
    %c0_i32_1 = arith.constant 0 : i32
    return %c0_i32, %c0_i32_0 : i32, i32
  }
  func.func @transform_1(%arg0: i32) -> (i32, i32) {
    %c0_i32 = arith.constant 0 : i32
    %c0_i32_0 = arith.constant 0 : i32
    %c0_i32_1 = arith.constant 0 : i32
    return %c0_i32, %c0_i32_0 : i32, i32
  }
  func.func @transform_2(%arg0: i32) -> (i32, i32) {
    %c0_i32 = arith.constant 0 : i32
    %c0_i32_0 = arith.constant 0 : i32
    %c0_i32_1 = arith.constant 0 : i32
    return %c0_i32, %c0_i32_0 : i32, i32
  }
  func.func @transform_3(%arg0: i32) -> (i32, i32) {
    %c0_i32 = arith.constant 0 : i32
    %c0_i32_0 = arith.constant 0 : i32
    %c0_i32_1 = arith.constant 0 : i32
    return %c0_i32, %c0_i32_0 : i32, i32
  }
  func.func @transform_4(%arg0: i32) -> (i32, i32) {
    %c0_i32 = arith.constant 0 : i32
    %c0_i32_0 = arith.constant 0 : i32
    %c0_i32_1 = arith.constant 0 : i32
    return %c0_i32, %c0_i32_0 : i32, i32
  }
  func.func @transform_5(%arg0: i32) -> (i32, i32) {
    %c0_i32 = arith.constant 0 : i32
    %c0_i32_0 = arith.constant 0 : i32
    %c0_i32_1 = arith.constant 0 : i32
    return %c0_i32, %c0_i32_0 : i32, i32
  }
  func.func @transform_6(%arg0: i32) -> (i32, i32) {
    %c0_i32 = arith.constant 0 : i32
    %c0_i32_0 = arith.constant 0 : i32
    %c0_i32_1 = arith.constant 0 : i32
    return %c0_i32, %c0_i32_0 : i32, i32
  }
  func.func @transform_7(%arg0: i32) -> (i32, i32, i32) {
    %c0_i32 = arith.constant 0 : i32
    %c0_i32_0 = arith.constant 0 : i32
    %c0_i32_1 = arith.constant 0 : i32
    return %arg0, %c0_i32, %c0_i32_0 : i32, i32, i32
  }
  func.func @transform_8(%arg0: i32) -> (i32, i32, i32) {
    %c0_i32 = arith.constant 0 : i32
    %c0_i32_0 = arith.constant 0 : i32
    %c0_i32_1 = arith.constant 0 : i32
    return %arg0, %c0_i32, %c0_i32_0 : i32, i32, i32
  }
  func.func @transform_9(%arg0: i32) -> (i32, i32, i32) {
    %c0_i32 = arith.constant 0 : i32
    %c0_i32_0 = arith.constant 0 : i32
    %c0_i32_1 = arith.constant 0 : i32
    return %arg0, %c0_i32, %c0_i32_0 : i32, i32, i32
  }
  func.func @transform_10(%arg0: i32) -> (i32, i32, i32) {
    %c0_i32 = arith.constant 0 : i32
    %c0_i32_0 = arith.constant 0 : i32
    %c0_i32_1 = arith.constant 0 : i32
    return %arg0, %c0_i32, %c0_i32_0 : i32, i32, i32
  }
  func.func @transform_11(%arg0: i32) -> (i32, i32, i32) {
    %c0_i32 = arith.constant 0 : i32
    %c0_i32_0 = arith.constant 0 : i32
    %c0_i32_1 = arith.constant 0 : i32
    return %arg0, %c0_i32, %c0_i32_0 : i32, i32, i32
  }
  func.func @transform_12(%arg0: i32) -> (i32, i32, i32) {
    %c0_i32 = arith.constant 0 : i32
    %c0_i32_0 = arith.constant 0 : i32
    %c0_i32_1 = arith.constant 0 : i32
    return %arg0, %c0_i32, %c0_i32_0 : i32, i32, i32
  }
  func.func @transform_13(%arg0: i32) -> (i32, i32, i32) {
    %c0_i32 = arith.constant 0 : i32
    %c0_i32_0 = arith.constant 0 : i32
    %c0_i32_1 = arith.constant 0 : i32
    return %arg0, %c0_i32, %c0_i32_0 : i32, i32, i32
  }
  func.func @transform_14(%arg0: i32) -> (i32, i32, i32) {
    %c0_i32 = arith.constant 0 : i32
    %c0_i32_0 = arith.constant 0 : i32
    %c0_i32_1 = arith.constant 0 : i32
    return %arg0, %c0_i32, %c0_i32_0 : i32, i32, i32
  }
  func.func @transform_15(%arg0: i32) -> (i32, i32) {
    %c0_i32 = arith.constant 0 : i32
    %c0_i32_0 = arith.constant 0 : i32
    %c0_i32_1 = arith.constant 0 : i32
    return %c0_i32, %c0_i32_0 : i32, i32
  }
  func.func @transform_16(%arg0: i32) -> (i32, i32) {
    %c0_i32 = arith.constant 0 : i32
    %c0_i32_0 = arith.constant 0 : i32
    %c0_i32_1 = arith.constant 0 : i32
    return %c0_i32, %c0_i32_0 : i32, i32
  }
}

</mosaic_0001>

<bundles_post_ra>
// kernel: tile.26
= control target key start
LH: loop header
LB: loop body
LE: loop exit
PB: predicated region body
PF: predicated region fallthrough
CT: control target
= control target key end

     0   :  { %s22_s0 = inlined_call_operand.vmem [shape: f32[2], index: 0, kind: input, shape index: {}]   ;;  %s23_s1 = inlined_call_operand.vmem [shape: f32[4,2], index: 1, kind: output, shape index: {}]  }
   0x1   :  { %v4_v0 = vld [vmem:[%s22_s0] ss:$0 sm:$0xff] }
   0x2   :  { %5 = vst [vmem:[%s23_s1] sm:$0xf] %v4_v0 }

// kernel: mul.21
= control target key start
LH: loop header
LB: loop body
LE: loop exit
PB: predicated region body
PF: predicated region fallthrough
CT: control target
= control target key end

     0   :  { %vm8_vm0 = vcmask 15360   ;;  %s40_s8 = smov 2   ;;  %s41_s9 = smov 4   ;;  %vm14_vm1 = vcmask 64560   ;;  %vm20_vm2 = vcmask 48160   ;;  %vm26_vm3 = vcmask 31760   ;;  %s58_s0 = inlined_call_operand.vmem [shape: f32[4,2], index: 0, kind: input, shape index: {}]   ;;  %s59_s1 = inlined_call_operand.vmem [shape: f32[8], index: 1, kind: output, shape index: {}]  }
   0x1   :  { %v5_v0 = vld [vmem:[%s58_s0] sm:$0xf]  ;;  %s39_s0 = smov 6  }
   0x2   :  { %6 = vst [vmem:[#allocation1] sm:$0xf] %v5_v0 }
   0x9   :  { %v11_v1 = vld [vmem:[#allocation1 + $0x3] sm:$0x1]   ;;  %v23_v2 = vld [vmem:[#allocation1 + $0x1] sm:$0x1]   ;;  %v7_v3 = vld [vmem:[#allocation1] sm:$0x1]  }
   0xa   :  { %12 = vrot.lane.b32.xlu0 %v11_v1, %s39_s0  ;;  %24 = vrot.lane.b32.xlu1 %v23_v2, %s40_s8  ;;  %v17_v4 = vld [vmem:[#allocation1 + $0x2] sm:$0x1]   ;;  %9 = vst.msk [vmem:[#allocation0] sm:$0x1] %vm8_vm0, %v7_v3  }
   0xe   :  { %18 = vrot.lane.b32.xlu0 %v17_v4, %s41_s9 }
  0x7c   :  { %v13_v5 = vpop.permute.xlu0 %12   ;;  %v25_v6 = vpop.permute.xlu1 %24  }
  0x7d   :  { %15 = vst.msk [vmem:[#allocation0] sm:$0x1] %vm14_vm1, %v13_v5  }
  0x80   :  { %v19_v7 = vpop.permute.xlu0 %18  }
  0x81   :  { %21 = vst.msk [vmem:[#allocation0] sm:$0x1] %vm20_vm2, %v19_v7  }
  0x82   :  { %27 = vst.msk [vmem:[#allocation0] sm:$0x1] %vm26_vm3, %v25_v6  }
  0x89   :  { %v32_v8 = vld [vmem:[#allocation0] sm:$0x1] }
  0x8a   :  { %35 = vst [vmem:[%s59_s1] sm:$0x1] %v32_v8 }

// kernel: tile.42
= control target key start
LH: loop header
LB: loop body
LE: loop exit
PB: predicated region body
PF: predicated region fallthrough
CT: control target
= control target key end

     0   :  { %vm43_vm0 = vcmask 1047556   ;;  %vm45_vm1 = vcmask 130048   ;;  %vm55_vm2 = vcmask 261248   ;;  %s112_s0 = inlined_call_operand.vmem [shape: f32[8,2,16], index: 0, kind: input, shape index: {}]   ;;  %s113_s1 = inlined_call_operand.vmem [shape: f32[8,32], index: 1, kind: output, shape index: {}]  }
   0x1   :  { %v63_v0 = vld [vmem:[%s112_s0 + $0xe] sm:$0x3]  ;;  %v64_v1 = vld [vmem:[%s112_s0 + $0xc] sm:$0x3]  ;;  %v65_v2 = vld [vmem:[%s112_s0 + $0xa] sm:$0x3] }
   0x2   :  { %9 = vst [vmem:[#allocation0 + $0x38] sm:$0x3] %v63_v0  ;;  %14 = vst [vmem:[#allocation0 + $0x30] sm:$0x3] %v64_v1  ;;  %v66_v3 = vld [vmem:[%s112_s0 + $0x8] sm:$0x3] }
   0x3   :  { %19 = vst [vmem:[#allocation0 + $0x28] sm:$0x3] %v65_v2  ;;  %v67_v4 = vld [vmem:[%s112_s0 + $0x6] sm:$0x3]  ;;  %v68_v5 = vld [vmem:[%s112_s0 + $0x4] sm:$0x3] }
   0x4   :  { %24 = vst [vmem:[#allocation0 + $0x20] sm:$0x3] %v66_v3  ;;  %29 = vst [vmem:[#allocation0 + $0x18] sm:$0x3] %v67_v4  ;;  %v69_v6 = vld [vmem:[%s112_s0 + $0x2] sm:$0x3] }
   0x5   :  { %34 = vst [vmem:[#allocation0 + $0x10] sm:$0x3] %v68_v5  ;;  %v39_v7 = vld [vmem:[%s112_s0] sm:$0x3]  ;;  %38 = vst [vmem:[#allocation0 + $0x8] sm:$0x3] %v69_v6 }
   0x6   :  { %40 = vst [vmem:[#allocation0] sm:$0x3] %v39_v7  ;;  %s71_s0 = smov 16  }
   0xb   :  { %v42_v8 = vld [vmem:[#allocation0] ss:$8 sm:$0xf0]   ;;  %v50_v9 = vld [vmem:[#allocation0 + $0x1] ss:$8 sm:$0xf0]  }
   0xd   :  { %v41_v10 = vld [vmem:[#allocation0] ss:$8 sm:$0xf]   ;;  %v48_v11 = vld [vmem:[#allocation0 + $0x1] ss:$8 sm:$0xf]  }
   0xe   :  { %v44_v12 = vsel %vm43_vm0, %v42_v8, %v41_v10  ;;  %v52_v13 = vsel %vm43_vm0, %v50_v9, %v48_v11 }
   0xf   :  { %53 = vrot.lane.b32.xlu0 %v52_v13, %s71_s0  ;;  %46 = vst.msk [vmem:[%s113_s1] sm:$0xff] %vm45_vm1, %v44_v12  }
  0x81   :  { %v54_v14 = vpop.permute.xlu0 %53  }
  0x82   :  { %56 = vst.msk [vmem:[%s113_s1] sm:$0xff] %vm55_vm2, %v54_v14  }

// kernel: tile.37
= control target key start
LH: loop header
LB: loop body
LE: loop exit
PB: predicated region body
PF: predicated region fallthrough
CT: control target
= control target key end

     0   :  { %vm43_vm0 = vcmask 1047556   ;;  %vm45_vm1 = vcmask 130048   ;;  %s94_s22 = smov 16   ;;  %s95_s25 = smov 32   ;;  %vm55_vm2 = vcmask 523648   ;;  %vm65_vm3 = vcmask 392448   ;;  %s147_s0 = inlined_call_operand.vmem [shape: f32[8,4,16], index: 0, kind: input, shape index: {}]   ;;  %s148_s1 = inlined_call_operand.vmem [shape: f32[8,64], index: 1, kind: output, shape index: {}]  }
   0x1   :  { %v83_v0 = vld [vmem:[%s147_s0 + $0x1c] sm:$0xf]  ;;  %v84_v1 = vld [vmem:[%s147_s0 + $0x18] sm:$0xf]  ;;  %v85_v2 = vld [vmem:[%s147_s0 + $0x14] sm:$0xf] }
   0x2   :  { %9 = vst [vmem:[#allocation0 + $0x38] sm:$0xf] %v83_v0  ;;  %14 = vst [vmem:[#allocation0 + $0x30] sm:$0xf] %v84_v1  ;;  %v86_v3 = vld [vmem:[%s147_s0 + $0x10] sm:$0xf] }
   0x3   :  { %19 = vst [vmem:[#allocation0 + $0x28] sm:$0xf] %v85_v2  ;;  %v87_v4 = vld [vmem:[%s147_s0 + $0xc] sm:$0xf]  ;;  %v88_v5 = vld [vmem:[%s147_s0 + $0x8] sm:$0xf] }
   0x4   :  { %24 = vst [vmem:[#allocation0 + $0x20] sm:$0xf] %v86_v3  ;;  %29 = vst [vmem:[#allocation0 + $0x18] sm:$0xf] %v87_v4  ;;  %v89_v6 = vld [vmem:[%s147_s0 + $0x4] sm:$0xf] }
   0x5   :  { %34 = vst [vmem:[#allocation0 + $0x10] sm:$0xf] %v88_v5  ;;  %v39_v7 = vld [vmem:[%s147_s0] sm:$0xf]  ;;  %38 = vst [vmem:[#allocation0 + $0x8] sm:$0xf] %v89_v6 }
   0x6   :  { %40 = vst [vmem:[#allocation0] sm:$0xf] %v39_v7  ;;  %s93_s0 = smov 48   ;;  %vm75_vm4 = vcmask 261248  }
   0xb   :  { %v50_v8 = vld [vmem:[#allocation0 + $0x3] ss:$8 sm:$0xf0]   ;;  %v60_v9 = vld [vmem:[#allocation0 + $0x2] ss:$8 sm:$0xf0]  }
   0xc   :  { %v70_v14 = vld [vmem:[#allocation0 + $0x1] ss:$8 sm:$0xf0]   ;;  %v42_v17 = vld [vmem:[#allocation0] ss:$8 sm:$0xf0]  }
   0xd   :  { %v48_v10 = vld [vmem:[#allocation0 + $0x3] ss:$8 sm:$0xf]   ;;  %v58_v11 = vld [vmem:[#allocation0 + $0x2] ss:$8 sm:$0xf]  }
   0xe   :  { %v52_v12 = vsel %vm43_vm0, %v50_v8, %v48_v10  ;;  %v68_v13 = vld [vmem:[#allocation0 + $0x1] ss:$8 sm:$0xf]   ;;  %v41_v16 = vld [vmem:[#allocation0] ss:$8 sm:$0xf]   ;;  %v62_v18 = vsel %vm43_vm0, %v60_v9, %v58_v11 }
   0xf   :  { %53 = vrot.lane.b32.xlu0 %v52_v12, %s93_s0  ;;  %v72_v15 = vsel %vm43_vm0, %v70_v14, %v68_v13  ;;  %v44_v19 = vsel %vm43_vm0, %v42_v17, %v41_v16 }
  0x10   :  { %73 = vrot.lane.b32.xlu1 %v72_v15, %s94_s22  ;;  %46 = vst.msk [vmem:[%s148_s1] sm:$0xff] %vm45_vm1, %v44_v19  }
  0x13   :  { %63 = vrot.lane.b32.xlu0 %v62_v18, %s95_s25 }
  0x81   :  { %v54_v20 = vpop.permute.xlu0 %53  }
  0x82   :  { %56 = vst.msk [vmem:[%s148_s1] sm:$0xff] %vm55_vm2, %v54_v20   ;;  %v74_v21 = vpop.permute.xlu1 %73  }
  0x85   :  { %v64_v22 = vpop.permute.xlu0 %63  }
  0x86   :  { %66 = vst.msk [vmem:[%s148_s1] sm:$0xff] %vm65_vm3, %v64_v22  }
  0x87   :  { %76 = vst.msk [vmem:[%s148_s1] sm:$0xff] %vm75_vm4, %v74_v21  }

// kernel: glm_transformer.1
= control target key start
LH: loop header
LB: loop body
LE: loop exit
PB: predicated region body
PF: predicated region fallthrough
CT: control target
= control target key end

     0   :  { %s2894_s0 = inlined_call_operand.vmem [shape: bf16[8,64], index: 0, kind: input, shape index: {}]   ;;  %s2895_s1 = inlined_call_operand.vmem [shape: f32[8,64], index: 1, kind: input, shape index: {}]   ;;  %s2896_s2 = inlined_call_operand.vmem [shape: f32[8,64], index: 2, kind: input, shape index: {}]   ;;  %s2897_s3 = inlined_call_operand.vmem [shape: f32[8,32], index: 3, kind: input, shape index: {}]   ;;  %s2898_s4 = inlined_call_operand.vmem [shape: f32[8,32], index: 4, kind: input, shape index: {}]   ;;  %s2899_s5 = inlined_call_operand.vmem [shape: f32[64,64], index: 5, kind: input, shape index: {}]   ;;  %s2900_s6 = inlined_call_operand.vmem [shape: f32[32,32], index: 6, kind: input, shape index: {}]   ;;  %s2901_s7 = inlined_call_operand.vmem [shape: bf16[2,1,64], index: 7, kind: input, shape index: {}]   ;;  %s2902_s8 = inlined_call_operand.vmem [shape: bf16[2,64,128], index: 8, kind: input, shape index: {}]   ;;  %s2903_s9 = inlined_call_operand.vmem [shape: bf16[2,1,128], index: 9, kind: input, shape index: {}]   ;;  %s2904_s10 = inlined_call_operand.vmem [shape: bf16[2,64,64], index: 10, kind: input, shape index: {}]   ;;  %s2905_s11 = inlined_call_operand.vmem [shape: bf16[2,1,64], index: 11, kind: input, shape index: {}]   ;;  %s2906_s12 = inlined_call_operand.vmem [shape: bf16[2,64,128], index: 12, kind: input, shape index: {}]   ;;  %s2907_s13 = inlined_call_operand.vmem [shape: bf16[2,64,128], index: 13, kind: input, shape index: {}]   ;;  %s2908_s14 = inlined_call_operand.vmem [shape: bf16[2,128,64], index: 14, kind: input, shape index: {}]   ;;  %s2909_s15 = inlined_call_operand.vmem [shape: bf16[1,64], index: 15, kind: input, shape index: {}]   ;;  %s2910_s16 = inlined_call_operand.hbm [shape: bf16[8,64], index: 16, kind: output, shape index: {}]  }
   0x1   :  { %2912 = sst [smem:[#allocation7_spill]] %s2894_s0 }
   0x2   :  { %2913 = sst [smem:[#allocation8_spill]] %s2898_s4 }
   0x3   :  { %2914 = sst [smem:[#allocation9_spill]] %s2902_s8 }
   0x4   :  { %2915 = sst [smem:[#allocation10_spill]] %s2909_s15 }
   0x5   :  { %2916 = sst [smem:[#allocation11_spill]] %s2910_s16 }
   0x6   :  { %21 = vsyncpa [#allocation4], 0  ;;  %s2567_s21 = smov 0  }
   0x7 LB: > { %2917 = sst [smem:[#allocation6_spill]] %s2470_s21  ;;  %s2573_s22 = sadd.s32 4294967295, %s2470_s21   ;;  %s2470_s21 = sphi %s2567_s21, %s27_s21  }
   0x8   : > { %p2099_p0 = scmp.ge.s32.totalorder %s2470_s21, 1  ;;  %p522_p1 = scmp.lt.s32.totalorder %s2470_s21, 3 }
   0xa   : > { %p523_p2 = pnand %p2099_p0, %p522_p1 }
   0xb   : > { %p596_p3 = scmp.lt.s32.totalorder (!%p523_p2), %s2573_s22, 1  ;;  %s2918_s8 = sld [smem:[#allocation9_spill]] (!%p523_p2) }
   0xc   : > { %526 = sbr.rel (%p523_p2) target bundleno = 2957 (0xb8d), region = 84  ;;  %p2110_p4 = scmp.ne.s32.totalorder (!%p523_p2), %s2573_s22, 0 }
  0x11   : > { %s2579_s23 = scalar_select %p596_p3, %s2573_s22, 1 }
  0x12   : > { %s2919_s25 = sld [smem:[#allocation7_spill]] (!%p2110_p4) }
  0x13   : > { %s2160_s27 = sshll.u32 %s2579_s23, 5  ;;  %s614_s16 = scalar_lea.vmem %s2905_s11, %s2579_s23 }
  0x14   : > { %s2589_s30 = scalar_lea.vmem %s2918_s8, %s2160_s27  ;;  %s2598_s21 = scalar_lea.vmem %s2904_s10, %s2160_s27 }
  0x15   : > { %s2607_s4 = scalar_lea.vmem %s2906_s12, %s2160_s27  ;;  %s2612_s8 = scalar_lea.vmem %s2907_s13, %s2160_s27 }
  0x16   : > { %s2164_s0 = sshll.u32 %s2579_s23, 6  ;;  %634 = sbr.rel (%p2110_p4) target bundleno = 31 (0x1f), region = 88 }
  0x17   : > { %s2618_s19 = scalar_lea.vmem %s2908_s14, %s2164_s0 }
  0x1b   : > { %v635_v0 = vld [vmem:[%s2919_s25] sm:$0xf]  ;;  %vm637_vm0 = vcmask 523264  }
  0x1c   : > { %v636_v1 = vunpack.c.l.bf16 %v635_v0 }
  0x1e   : > { %638 = vst.msk [vmem:[#allocation2] sm:$0xff] %vm637_vm0, %v636_v1 }
  0x1f PF: > { %vm643_vm1 = vcmask 523264   ;;  %v2386_v5 = vld [vmem:[%s2589_s30 + $0x18] sm:$0xff]   ;;  %v2472_v6 = vmov 0.0   ;;  %vm2473_vm2 = vmmov 0   ;;  %v2387_v7 = vld [vmem:[%s2589_s30 + $0x10] sm:$0xff]   ;;  %v2388_v8 = vld [vmem:[%s2589_s30 + $0x8] sm:$0xff]   ;;  %v652_v20 = vlaneseq  ;;  %s2920_s29 = scalar_lea.vmem %s2901_s7, %s2579_s23  ;;  %s2921_s24 = scalar_lea.vmem %s2903_s9, %s2579_s23 }
  0x20   : > { %2224 = vmatprep.subr.bf16.mxu0 %v2472_v6  ;;  %2232 = vmatprep.mubr.msk.bf16.mxu0 %vm2473_vm2, %v2472_v6  ;;  %v2389_v9 = vld [vmem:[%s2589_s30] sm:$0xff]   ;;  %v746_v11 = vld [vmem:[%s2899_s5 + $0x38] sm:$0xff]  ;;  %v745_v12 = vld [vmem:[%s2899_s5 + $0x30] sm:$0xff]  ;;  %s2474_s0 = smov 64   ;;  %s2475_s25 = smov 32   ;;  %vm826_vm3 = vcmask 261120  }
  0x21   : > { %2225 = vmatpush3.bf16.msra.mxu0 %v2386_v5  ;;  %2236 = vmatprep.subr.mxu1 %v2472_v6  ;;  %v904_v10 = vld [vmem:[%s2897_s3] sm:$0xff]  ;;  %v744_v13 = vld [vmem:[%s2899_s5 + $0x28] sm:$0xff]  ;;  %v742_v15 = vld [vmem:[%s2899_s5 + $0x18] sm:$0xff]  ;;  %v2672_v21 = vshrl.u32 %v652_v20, 7  ;;  %s2476_s28 = smov 112   ;;  %s2922_s17 = sld [smem:[#allocation8_spill]] }
  0x22   : > { %2226 = vmatprep.subr.bf16.mxu0 %v2472_v6  ;;  %2252 = vmatprep.mubr.msk.f32.mxu1 %vm2473_vm2, %v2472_v6  ;;  %v743_v14 = vld [vmem:[%s2899_s5 + $0x20] sm:$0xff]  ;;  %v741_v16 = vld [vmem:[%s2899_s5 + $0x10] sm:$0xff]  ;;  %v740_v30 = vld [vmem:[%s2899_s5 + $0x8] sm:$0xff]  ;;  %s2477_s20 = smov 48   ;;  %s2479_s15 = smov 80   ;;  %vm926_vm4 = vcmask 130048  }
  0x23   : > { %906 = vrot.lane.b32.xlu1 %v904_v10, %s2474_s0  ;;  %2237 = vmatpush3.msra.mxu1 %v746_v11  ;;  %v640_v22 = vld [vmem:[%s2920_s29] sm:$0x1]  ;;  %v2680_v24 = vsub.s32 0, %v2672_v21  ;;  %v823_v32 = vld [vmem:[%s2900_s6 + $0x18] sm:$0xff]  ;;  %v822_v33 = vld [vmem:[%s2900_s6 + $0x10] sm:$0xff]  ;;  %v920_v63 = vand.u32 127, %v652_v20 }
  0x24   : > { %2238 = vmatprep.subr.mxu1 %v2472_v6  ;;  %v641_v23 = vunpack.c.l.bf16 %v640_v22  ;;  %v739_v31 = vld [vmem:[%s2899_s5] sm:$0xff]  ;;  %v821_v34 = vld [vmem:[%s2900_s6 + $0x8] sm:$0xff]  ;;  %vm1003_vm6 = vcmask 64512   ;;  %vm1589_vm7 = vcmask 392192   ;;  %p2154_p5 = scmp.ne.s32.totalorder %s2573_s22, 1 }
  0x25   : > { %v2624_v2 = vld [vmem:[#allocation2] sm:$0xff]  ;;  %2227 = vmatpush3.bf16.msra.mxu0 %v2387_v7  ;;  %2239 = vmatpush3.msra.mxu1 %v745_v12  ;;  %vm921_vm5 = vcmp.le.s32.totalorder %v920_v63, %v2672_v21 }
  0x26   : > { %v642_v3 = vmul.f32 %v2624_v2, %v2624_v2  ;;  %2228 = vmatprep.subr.bf16.mxu0 %v2472_v6  ;;  %2240 = vmatprep.subr.mxu1 %v2472_v6  ;;  %v655_v25 = vrot.slane %v641_v23, %v2680_v24  ;;  %v820_v35 = vld [vmem:[%s2900_s6] sm:$0xff] }
  0x27   : > { %2241 = vmatpush3.msra.mxu1 %v744_v13  ;;  %v666_v36 = vld [vmem:[%s2921_s24] sm:$0x1]  ;;  %s2478_s24 = smov 96  }
  0x28   : > { %v644_v4 = vsel %vm643_vm1, %v642_v3, 0.0  ;;  %2242 = vmatprep.subr.mxu1 %v2472_v6  ;;  %v667_v37 = vunpack.c.l.bf16 %v666_v36  ;;  %v899_v46 = vld [vmem:[%s2895_s1] sm:$0xff] }
  0x29   : > { %645 = vadd.xlane.f32.xlu0 %v644_v4  ;;  %2229 = vmatpush3.bf16.msra.mxu0 %v2388_v8  ;;  %v901_v47 = vld [vmem:[%s2896_s2] sm:$0xff] }
  0x2a   : > { %2230 = vmatprep.subr.bf16.mxu0 %v2472_v6  ;;  %2243 = vmatpush3.msra.mxu1 %v743_v14  ;;  %v671_v38 = vrot.slane %v667_v37, %v2680_v24  ;;  %v910_v54 = vld [vmem:[%s2922_s17] sm:$0xff] }
  0x2b   : > { %2244 = vmatprep.subr.mxu1 %v2472_v6 }
  0x2c   : > { %2245 = vmatpush3.msra.mxu1 %v742_v15 }
  0x2d   : > { %2231 = vmatpush3.bf16.msra.mxu0 %v2389_v9  ;;  %2246 = vmatprep.subr.mxu1 %v2472_v6 }
  0x2e   : > { %2255 = vmatprep.subr.mxu0 %v2472_v6  ;;  %2247 = vmatpush3.msra.mxu1 %v741_v16 }
  0x2f   : > { %2248 = vmatprep.subr.mxu1 %v2472_v6 }
  0x30   : > { %2249 = vmatpush3.msra.mxu1 %v740_v30 }
  0x31   : > { %2250 = vmatprep.subr.mxu1 %v2472_v6 }
  0x32   : > { %2251 = vmatpush3.msra.mxu1 %v739_v31 }
  0x33   : > { %2281 = vmatprep.subr.mxu1 %v2472_v6 }
  0x95   : > { %v907_v58 = vpop.permute.xlu1 %906 }
  0xb2   : > { %v646_v17 = vpop.xlane.xlu0 %645 }
  0xb3   : > { %v648_v18 = vmul.f32 0.015625, %v646_v17 }
  0xb5   : > { %v649_v19 = vadd.f32 1e-05, %v648_v18 }
  0xb7   : > { %2410 = vrsqrt.f32 %v649_v19 }
  0xc4   : > { %v2411_v26 = vpop.eup %2410 }
  0xc5   : > { %v651_v27 = vmul.f32 %v2411_v26, %v2624_v2 }
  0xc7   : > { %v656_v28 = vmul.f32 %v655_v25, %v651_v27 }
  0xc9   : > { %v657_v29 = vpack.c.bf16 %v656_v28, %v656_v28 }
  0xcb   : > { %2233 = vmatmul.mubr.msk.bf16.vlgmr.msra.gmra.mxu0 %vm643_vm1, %v657_v29 }
  0xcc   : > { %2263 = vmatprep.mubr.msk.f32.mxu0 %vm2473_vm2, %v2472_v6  ;;  %2256 = vmatpush3.msra.mxu0 %v823_v32 }
  0xcd   : > { %2257 = vmatprep.subr.mxu0 %v2472_v6 }
  0xce   : > { %2258 = vmatpush3.msra.mxu0 %v822_v33 }
  0xcf   : > { %2259 = vmatprep.subr.mxu0 %v2472_v6 }
  0xd0   : > { %2260 = vmatpush3.msra.mxu0 %v821_v34 }
  0xd1   : > { %2261 = vmatprep.subr.mxu0 %v2472_v6 }
  0xd2   : > { %2262 = vmatpush3.msra.mxu0 %v820_v35 }
  0xd3   : > { %2266 = vmatprep.subr.mxu0 %v2472_v6 }
 0x18b   : > { %v733_v39 = vpop.f32.mrf.mxu0 }
 0x18c   : > { %v2717_v40 = vadd.f32 %v733_v39, %v671_v38 }
 0x18d   : > { %v2234_v41 = vpop.f32.mrf.mxu0 }
 0x18e   : > { %824 = vrot.lane.b32.xlu0 %v2717_v40, %s2474_s0  ;;  %2253 = vmatmul.mubr.msk.f32.vlgmr.msra.gmra.mxu1 %vm643_vm1, %v2717_v40  ;;  %v900_v49 = vmul.f32 %v899_v46, %v2717_v40  ;;  %v909_v59 = vmul.f32 %v907_v58, %v2717_v40  ;;  %v2390_v46 = vld [vmem:[%s2598_s21 + $0x18] sm:$0xff]  }
 0x18f   : > { %v736_v42 = vpop.f32.mrf.mxu0  ;;  %2283 = vmatprep.mubr.msk.f32.mxu1 %vm2473_vm2, %v2472_v6 }
 0x191   : > { %v2235_v43 = vpop.f32.mrf.mxu0 }
 0x192   : > { %1013 = vrot.lane.b32.xlu0 %v2717_v40, %s2475_s25 }
 0x200   : > { %v825_v44 = vpop.permute.xlu0 %824 }
 0x201   : > { %2264 = vmatmul.mubr.msk.f32.vlgmr.msra.gmra.mxu0 %vm826_vm3, %v825_v44 }
 0x202   : > { %2268 = vmatprep.mubr.msk.f32.mxu0 %vm2473_vm2, %v2472_v6 }
 0x204   : > { %v1014_v45 = vpop.permute.xlu0 %1013 }
 0x205   : > { %2282 = vmatpush3.msra.mxu1 %v1014_v45 }
 0x206   : > { %2291 = vmatprep.subr.mxu1 %v2472_v6 }
 0x24e   : > { %v816_v48 = vpop.f32.mrf.mxu1 }
 0x24f   : > { %v902_v50 = vmul.f32 %v901_v47, %v816_v48 }
 0x250   : > { %v2254_v51 = vpop.f32.mrf.mxu1 }
 0x251   : > { %v903_v52 = vadd.f32 %v902_v50, %v900_v49  ;;  %v2391_v49 = vld [vmem:[%s2598_s21 + $0x10] sm:$0xff]   ;;  %v2392_v51 = vld [vmem:[%s2598_s21 + $0x8] sm:$0xff]  }
 0x253   : > { %v922_v53 = vmul.f32 0.25, %v903_v52  ;;  %v2393_v52 = vld [vmem:[%s2598_s21] sm:$0xff]  }
 0x255   : > { %1091 = vrot.lane.b32.xlu0 %v922_v53, %s2476_s28 }
 0x2c1   : > { %v895_v55 = vpop.f32.mrf.mxu0 }
 0x2c2   : > { %v911_v56 = vmul.f32 %v910_v54, %v895_v55 }
 0x2c3   : > { %v2265_v57 = vpop.f32.mrf.mxu0 }
 0x2c4   : > { %913 = vrot.lane.b32.xlu1 %v911_v56, %s2474_s0 }
 0x2c7   : > { %v1092_v9 = vpop.permute.xlu0 %1091 }
 0x336   : > { %v914_v60 = vpop.permute.xlu1 %913 }
 0x337   : > { %v916_v61 = vadd.f32 %v914_v60, %v909_v59 }
 0x339   : > { %1252 = vrot.lane.b32.xlu0 %v916_v61, %s2477_s20  ;;  %924 = vrot.lane.b32.xlu1 %v916_v61, %s2474_s0  ;;  %s2480_s0 = smov 16  }
 0x33d   : > { %1250 = vrot.lane.b32.xlu0 %v922_v53, %s2478_s24 }
 0x341   : > { %1416 = vrot.lane.b32.xlu0 %v922_v53, %s2479_s15 }
 0x3ab   : > { %v925_v62 = vpop.permute.xlu1 %924  ;;  %v1253_v11 = vpop.permute.xlu0 %1252 }
 0x3ac   : > { %2267 = vmatpush3.xpose.msk.msra.mxu0 %vm926_vm4, %v925_v62 }
 0x3ad   : > { %2271 = vmatprep.subr.mxu0 %v2472_v6 }
 0x3af   : > { %2269 = vmatmul.mubr.msk.f32.vlgmr.msra.gmra.mxu0 %vm926_vm4, %v922_v53  ;;  %v1251_v12 = vpop.permute.xlu0 %1250 }
 0x3b0   : > { %2272 = vmatpush3.msra.mxu0 %v1014_v45  ;;  %2273 = vmatprep.mubr.msk.f32.mxu0 %vm2473_vm2, %v2472_v6 }
 0x3b1   : > { %2276 = vmatprep.subr.mxu0 %v2472_v6 }
 0x3b3   : > { %v1417_v13 = vpop.permute.xlu0 %1416 }
 0x46f   : > { %v998_v0 = vpop.f32.mrf.mxu0 }
 0x470   : > { %v1002_v1 = vsel %vm921_vm5, %v998_v0, -1e+30 }
 0x471   : > { %v2270_v3 = vpop.f32.mrf.mxu0  ;;  %v1004_v4 = vsel %vm1003_vm6, %v1002_v1, -inf }
 0x472   : > { %1005 = vmax.xlane.f32.xlu1 %v1004_v4 }
 0x4fb   : > { %v1006_v5 = vpop.xlane.xlu1 %1005 }
 0x4fc   : > { %v1007_v7 = vsub.f32 %v1002_v1, %v1006_v5 }
 0x4fe   : > { %v1008_v8 = vmul.f32 1.442695, %v1007_v7 }
 0x500   : > { %2412 = vpow2.f32 %v1008_v8 }
 0x50d   : > { %v2756_v10 = vpop.eup %2412 }
 0x50e   : > { %2274 = vmatmul.mubr.msk.f32.vlgmr.msra.gmra.mxu0 %vm1003_vm6, %v2756_v10  ;;  %v1010_v45 = vsel %vm1003_vm6, %v2756_v10, 0.0 }
 0x50f   : > { %2277 = vmatpush3.xpose.msk.msra.mxu0 %vm926_vm4, %v925_v62  ;;  %2278 = vmatprep.mubr.msk.f32.mxu0 %vm2473_vm2, %v2472_v6 }
 0x510   : > { %2286 = vmatprep.subr.mxu0 %v2472_v6 }
 0x512   : > { %2279 = vmatmul.mubr.msk.f32.vlgmr.msra.gmra.mxu0 %vm926_vm4, %v1092_v9 }
 0x513   : > { %2287 = vmatpush3.xpose.msk.msra.mxu0 %vm926_vm4, %v1253_v11  ;;  %2288 = vmatprep.mubr.msk.f32.mxu0 %vm2473_vm2, %v2472_v6 }
 0x514   : > { %2296 = vmatprep.subr.mxu0 %v2472_v6 }
 0x516   : > { %2289 = vmatmul.mubr.msk.f32.vlgmr.msra.gmra.mxu0 %vm926_vm4, %v1251_v12 }
 0x517   : > { %2297 = vmatpush3.xpose.msk.msra.mxu0 %vm926_vm4, %v1253_v11  ;;  %2298 = vmatprep.mubr.msk.f32.mxu0 %vm2473_vm2, %v2472_v6 }
 0x518   : > { %2306 = vmatprep.subr.bf16.mxu0 %v2472_v6 }
 0x51a   : > { %2299 = vmatmul.mubr.msk.f32.vlgmr.msra.gmra.mxu0 %vm926_vm4, %v1417_v13 }
 0x51b   : > { %2314 = vmatprep.mubr.msk.bf16.mxu0 %vm2473_vm2, %v2472_v6  ;;  %2307 = vmatpush3.bf16.msra.mxu0 %v2390_v46 }
 0x51c   : > { %2308 = vmatprep.subr.bf16.mxu0 %v2472_v6 }
 0x51f   : > { %2309 = vmatpush3.bf16.msra.mxu0 %v2391_v49 }
 0x520   : > { %2310 = vmatprep.subr.bf16.mxu0 %v2472_v6 }
 0x523   : > { %2311 = vmatpush3.bf16.msra.mxu0 %v2392_v51 }
 0x524   : > { %2312 = vmatprep.subr.bf16.mxu0 %v2472_v6 }
 0x527   : > { %2313 = vmatpush3.bf16.msra.mxu0 %v2393_v52 }
 0x528   : > { %2330 = vmatprep.subr.bf16.mxu0 %v2472_v6 }
 0x5ce   : > { %v2777_v14 = vpop.f32.mrf.mxu0 }
 0x5d0   : > { %v2275_v15 = vpop.f32.mrf.mxu0 }
 0x5d2   : > { %v1161_v16 = vpop.f32.mrf.mxu0 }
 0x5d3   : > { %v1165_v17 = vsel %vm921_vm5, %v1161_v16, -1e+30 }
 0x5d4   : > { %v2280_v18 = vpop.f32.mrf.mxu0  ;;  %v1166_v19 = vsel %vm1003_vm6, %v1165_v17, -inf }
 0x5d5   : > { %1167 = vmax.xlane.f32.xlu0 %v1166_v19 }
 0x5d6   : > { %v1324_v20 = vpop.f32.mrf.mxu0 }
 0x5d7   : > { %v1328_v22 = vsel %vm921_vm5, %v1324_v20, -1e+30  ;;  %v2394_v20 = vld [vmem:[%s2607_s4 + $0x18] sm:$0xff]  }
 0x5d8   : > { %v2290_v23 = vpop.f32.mrf.mxu0  ;;  %v1329_v25 = vsel %vm1003_vm6, %v1328_v22, -inf }
 0x5d9   : > { %1330 = vmax.xlane.f32.xlu1 %v1329_v25  ;;  %v2396_v23 = vld [vmem:[%s2607_s4 + $0x10] sm:$0xff]   ;;  %v2398_v25 = vld [vmem:[%s2607_s4 + $0x8] sm:$0xff]  }
 0x5da   : > { %v1486_v26 = vpop.f32.mrf.mxu0 }
 0x5db   : > { %v1490_v27 = vsel %vm921_vm5, %v1486_v26, -1e+30  ;;  %v2399_v26 = vld [vmem:[%s2612_s8 + $0x8] sm:$0xff]  }
 0x5dc   : > { %v2300_v28 = vpop.f32.mrf.mxu0  ;;  %v1491_v29 = vsel %vm1003_vm6, %v1490_v27, -inf }
 0x5dd   : > { %1492 = vmax.xlane.f32.xlu1 %v1491_v29  ;;  %v2401_v28 = vld [vmem:[%s2612_s8] sm:$0xff]  }
 0x5ee   : > { %1338 = vrot.lane.b32.xlu1 %v2717_v40, %s2480_s0 }
 0x65e   : > { %v1168_v30 = vpop.xlane.xlu0 %1167 }
 0x65f   : > { %v1169_v31 = vsub.f32 %v1165_v17, %v1168_v30 }
 0x661   : > { %v1170_v32 = vmul.f32 1.442695, %v1169_v31 }
 0x662   : > { %v1331_v33 = vpop.xlane.xlu1 %1330 }
 0x663   : > { %2414 = vpow2.f32 %v1170_v32  ;;  %v1332_v34 = vsub.f32 %v1328_v22, %v1331_v33  ;;  %v2395_v22 = vld [vmem:[%s2612_s8 + $0x18] sm:$0xff]   ;;  %v1668_v32 = vld [vmem:[%s614_s16] sm:$0x1]  ;;  %s2923_s16 = sld [smem:[#allocation10_spill]] (!%p2154_p5) }
 0x664   : > { %v1669_v33 = vunpack.c.l.bf16 %v1668_v32 }
 0x665   : > { %v1333_v35 = vmul.f32 1.442695, %v1332_v34 }
 0x666   : > { %v1493_v36 = vpop.xlane.xlu1 %1492  ;;  %v1681_v34 = vrot.slane %v1669_v33, %v2680_v24 }
 0x667   : > { %2416 = vpow2.f32 %v1333_v35  ;;  %v1494_v37 = vsub.f32 %v1490_v27, %v1493_v36  ;;  %v2400_v27 = vld [vmem:[%s2607_s4] sm:$0xff]  }
 0x669   : > { %v1495_v21 = vmul.f32 1.442695, %v1494_v37 }
 0x66a   : > { %v1339_v39 = vpop.permute.xlu1 %1338 }
 0x66b   : > { %2418 = vpow2.f32 %v1495_v21 }
 0x670   : > { %v2415_v38 = vpop.eup %2414 }
 0x671   : > { %2284 = vmatmul.mubr.msk.f32.vlgmr.msra.gmra.mxu1 %vm1003_vm6, %v2415_v38  ;;  %v1172_v41 = vsel %vm1003_vm6, %v2415_v38, 0.0  ;;  %v2402_v38 = vld [vmem:[%s2618_s19 + $0x38] sm:$0xff]  }
 0x672   : > { %2292 = vmatpush3.msra.mxu1 %v1339_v39  ;;  %1173 = vadd.xlane.f32.xlu1 %v1172_v41  ;;  %v2404_v41 = vld [vmem:[%s2618_s19 + $0x28] sm:$0xff]  }
 0x673   : > { %2293 = vmatprep.mubr.msk.f32.mxu1 %vm2473_vm2, %v2472_v6  ;;  %2301 = vmatprep.subr.mxu1 %v2472_v6 }
 0x674   : > { %v2417_v40 = vpop.eup %2416 }
 0x675   : > { %2294 = vmatmul.mubr.msk.f32.vlgmr.msra.gmra.mxu1 %vm1003_vm6, %v2417_v40  ;;  %v1335_v42 = vsel %vm1003_vm6, %v2417_v40, 0.0  ;;  %v2405_v40 = vld [vmem:[%s2618_s19 + $0x20] sm:$0xff]  }
 0x676   : > { %2302 = vmatpush3.msra.mxu1 %v1339_v39  ;;  %1336 = vadd.xlane.f32.xlu0 %v1335_v42  ;;  %v2403_v39 = vld [vmem:[%s2618_s19 + $0x30] sm:$0xff]   ;;  %v2406_v42 = vld [vmem:[%s2618_s19 + $0x18] sm:$0xff]  }
 0x677   : > { %2303 = vmatprep.mubr.msk.f32.mxu1 %vm2473_vm2, %v2472_v6  ;;  %2318 = vmatprep.subr.bf16.mxu1 %v2472_v6 }
 0x678   : > { %v2419_v43 = vpop.eup %2418 }
 0x679   : > { %2304 = vmatmul.mubr.msk.f32.vlgmr.msra.gmra.mxu1 %vm1003_vm6, %v2419_v43  ;;  %v1497_v44 = vsel %vm1003_vm6, %v2419_v43, 0.0  ;;  %v2407_v43 = vld [vmem:[%s2618_s19 + $0x10] sm:$0xff]  }
 0x67a   : > { %1498 = vadd.xlane.f32.xlu0 %v1497_v44  ;;  %2326 = vmatprep.mubr.msk.bf16.mxu1 %vm2473_vm2, %v2472_v6  ;;  %v2408_v44 = vld [vmem:[%s2618_s19 + $0x8] sm:$0xff]  }
 0x67b   : > { %2319 = vmatpush3.bf16.msra.mxu1 %v2394_v20 }
 0x67c   : > { %2320 = vmatprep.subr.bf16.mxu1 %v2472_v6 }
 0x67e   : > { %1011 = vadd.xlane.f32.xlu0 %v1010_v45  ;;  %v2409_v45 = vld [vmem:[%s2618_s19] sm:$0xff]  }
 0x67f   : > { %2321 = vmatpush3.bf16.msra.mxu1 %v2396_v23 }
 0x680   : > { %2322 = vmatprep.subr.bf16.mxu1 %v2472_v6 }
 0x683   : > { %2323 = vmatpush3.bf16.msra.mxu1 %v2398_v25 }
 0x684   : > { %2324 = vmatprep.subr.bf16.mxu1 %v2472_v6 }
 0x687   : > { %2325 = vmatpush3.bf16.msra.mxu1 %v2400_v27 }
 0x688   : > { %2342 = vmatprep.subr.bf16.mxu1 %v2472_v6 }
 0x6fb   : > { %v1174_v47 = vpop.xlane.xlu1 %1173 }
 0x6fc   : > { %2420 = vrcp.f32 %v1174_v47 }
 0x6ff   : > { %v1337_v48 = vpop.xlane.xlu0 %1336 }
 0x700   : > { %2422 = vrcp.f32 %v1337_v48 }
 0x703   : > { %v1499_v50 = vpop.xlane.xlu0 %1498 }
 0x704   : > { %2424 = vrcp.f32 %v1499_v50 }
 0x707   : > { %v1012_v1 = vpop.xlane.xlu0 %1011 }
 0x708   : > { %2426 = vrcp.f32 %v1012_v1 }
 0x709   : > { %v2421_v53 = vpop.eup %2420 }
 0x70d   : > { %v2423_v57 = vpop.eup %2422 }
 0x711   : > { %v2425_v61 = vpop.eup %2424 }
 0x715   : > { %v2427_v3 = vpop.eup %2426 }
 0x716   : > { %v1090_v5 = vmul.f32 %v2427_v3, %v2777_v14 }
 0x731   : > { %v1244_v54 = vpop.f32.mrf.mxu1 }
 0x732   : > { %v1249_v55 = vmul.f32 %v2421_v53, %v1244_v54 }
 0x733   : > { %v2285_v56 = vpop.f32.mrf.mxu1 }
 0x734   : > { %1576 = vrot.lane.b32.xlu0 %v1249_v55, %s2480_s0 }
 0x735   : > { %v1410_v58 = vpop.f32.mrf.mxu1 }
 0x736   : > { %v1415_v59 = vmul.f32 %v2423_v57, %v1410_v58 }
 0x737   : > { %v2295_v60 = vpop.f32.mrf.mxu1 }
 0x738   : > { %1580 = vrot.lane.b32.xlu1 %v1415_v59, %s2475_s25 }
 0x739   : > { %v1569_v62 = vpop.f32.mrf.mxu1 }
 0x73a   : > { %v1574_v63 = vmul.f32 %v2425_v61, %v1569_v62 }
 0x73b   : > { %v2305_v0 = vpop.f32.mrf.mxu1 }
 0x73c   : > { %1584 = vrot.lane.b32.xlu0 %v1574_v63, %s2477_s20 }
 0x7a6   : > { %v1577_v4 = vpop.permute.xlu0 %1576 }
 0x7a7   : > { %v1587_v8 = vsel %vm926_vm4, %v1090_v5, %v1577_v4 }
 0x7aa   : > { %v1581_v7 = vpop.permute.xlu1 %1580 }
 0x7ab   : > { %v1588_v9 = vsel %vm826_vm3, %v1587_v8, %v1581_v7 }
 0x7ae   : > { %v1585_v10 = vpop.permute.xlu0 %1584 }
 0x7af   : > { %v1590_v11 = vsel %vm1589_vm7, %v1588_v9, %v1585_v10 }
 0x7b0   : > { %v1591_v12 = vpack.c.bf16 %v1590_v11, %v1590_v11 }
 0x7b2   : > { %2315 = vmatmul.mubr.msk.bf16.vlgmr.msra.gmra.mxu0 %vm643_vm1, %v1591_v12 }
 0x7b3   : > { %2338 = vmatprep.mubr.msk.bf16.mxu0 %vm2473_vm2, %v2472_v6  ;;  %2331 = vmatpush3.bf16.msra.mxu0 %v2395_v22 }
 0x7b4   : > { %2332 = vmatprep.subr.bf16.mxu0 %v2472_v6 }
 0x872   : > { %v1661_v13 = vpop.f32.mrf.mxu0 }
 0x873   : > { %v2824_v14 = vadd.f32 %v1661_v13, %v2624_v2  ;;  %v2397_v2 = vld [vmem:[%s2612_s8 + $0x10] sm:$0xff]  }
 0x874   : > { %v2316_v15 = vpop.f32.mrf.mxu0  ;;  %2333 = vmatpush3.bf16.msra.mxu0 %v2397_v2 }
 0x875   : > { %v1670_v16 = vmul.f32 %v2824_v14, %v2824_v14  ;;  %2334 = vmatprep.subr.bf16.mxu0 %v2472_v6 }
 0x876   : > { %v1664_v17 = vpop.f32.mrf.mxu0 }
 0x877   : > { %v1671_v18 = vsel %vm643_vm1, %v1670_v16, 0.0 }
 0x878   : > { %1672 = vadd.xlane.f32.xlu0 %v1671_v18  ;;  %v2317_v19 = vpop.f32.mrf.mxu0  ;;  %2335 = vmatpush3.bf16.msra.mxu0 %v2399_v26 }
 0x879   : > { %2336 = vmatprep.subr.bf16.mxu0 %v2472_v6 }
 0x87c   : > { %2337 = vmatpush3.bf16.msra.mxu0 %v2401_v28 }
 0x901   : > { %v1673_v29 = vpop.xlane.xlu0 %1672 }
 0x902   : > { %v1674_v30 = vmul.f32 0.015625, %v1673_v29 }
 0x904   : > { %v1675_v31 = vadd.f32 1e-05, %v1674_v30 }
 0x906   : > { %2428 = vrsqrt.f32 %v1675_v31 }
 0x913   : > { %v2429_v35 = vpop.eup %2428 }
 0x914   : > { %v1677_v36 = vmul.f32 %v2429_v35, %v2824_v14 }
 0x916   : > { %v1682_v37 = vmul.f32 %v1681_v34, %v1677_v36 }
 0x918   : > { %v1683_v21 = vpack.c.bf16 %v1682_v37, %v1682_v37 }
 0x91a   : > { %2327 = vmatmul.mubr.msk.bf16.vlgmr.msra.gmra.mxu1 %vm643_vm1, %v1683_v21  ;;  %2339 = vmatmul.mubr.msk.bf16.vlgmr.msra.gmra.mxu0 %vm643_vm1, %v1683_v21 }
 0x91b   : > { %2358 = vmatprep.mubr.msk.bf16.mxu1 %vm2473_vm2, %v2472_v6  ;;  %2343 = vmatpush3.bf16.msra.mxu1 %v2402_v38 }
 0x91c   : > { %2344 = vmatprep.subr.bf16.mxu1 %v2472_v6 }
 0x91f   : > { %2345 = vmatpush3.bf16.msra.mxu1 %v2403_v39 }
 0x920   : > { %2346 = vmatprep.subr.bf16.mxu1 %v2472_v6 }
 0x923   : > { %2347 = vmatpush3.bf16.msra.mxu1 %v2404_v41 }
 0x924   : > { %2348 = vmatprep.subr.bf16.mxu1 %v2472_v6 }
 0x927   : > { %2349 = vmatpush3.bf16.msra.mxu1 %v2405_v40 }
 0x928   : > { %2350 = vmatprep.subr.bf16.mxu1 %v2472_v6 }
 0x92b   : > { %2351 = vmatpush3.bf16.msra.mxu1 %v2406_v42 }
 0x92c   : > { %2352 = vmatprep.subr.bf16.mxu1 %v2472_v6 }
 0x92f   : > { %2353 = vmatpush3.bf16.msra.mxu1 %v2407_v43 }
 0x930   : > { %2354 = vmatprep.subr.bf16.mxu1 %v2472_v6 }
 0x933   : > { %2355 = vmatpush3.bf16.msra.mxu1 %v2408_v44 }
 0x934   : > { %2356 = vmatprep.subr.bf16.mxu1 %v2472_v6 }
 0x937   : > { %2357 = vmatpush3.bf16.msra.mxu1 %v2409_v45 }
 0x9da   : > { %v1753_v46 = vpop.f32.mrf.mxu1  ;;  %v1825_v47 = vpop.f32.mrf.mxu0 }
 0x9db   : > { %v2145_v48 = vmul.f32 -1.442695, %v1753_v46 }
 0x9dc   : > { %v2328_v49 = vpop.f32.mrf.mxu1  ;;  %v2340_v50 = vpop.f32.mrf.mxu0 }
 0x9dd   : > { %2430 = vpow2.f32 %v2145_v48 }
 0x9de   : > { %v1756_v51 = vpop.f32.mrf.mxu1  ;;  %v1828_v52 = vpop.f32.mrf.mxu0 }
 0x9e0   : > { %v2329_v53 = vpop.f32.mrf.mxu1  ;;  %v2341_v54 = vpop.f32.mrf.mxu0 }
 0x9ea   : > { %v2431_v55 = vpop.eup %2430 }
 0x9eb   : > { %v1834_v56 = vadd.f32 1.0, %v2431_v55 }
 0x9ed   : > { %2432 = vrcp.f32 %v1834_v56 }
 0x9fa   : > { %v2433_v57 = vpop.eup %2432 }
 0x9fb   : > { %v1837_v58 = vmul.f32 %v2433_v57, %v1753_v46 }
 0x9fd   : > { %v1838_v59 = vmul.f32 %v1837_v58, %v1825_v47 }
 0x9ff   : > { %v1839_v60 = vpack.c.bf16 %v1838_v59, %v1838_v59 }
 0xa01   : > { %2359 = vmatmul.mubr.bf16.vlgmr.msra.gmra.mxu1 %v1839_v60 }
 0xac1   : > { %v1938_v6 = vpop.f32.mrf.mxu1 }
 0xac2   : > { %v1944_v61 = vadd.f32 %v1938_v6, %v2824_v14 }
 0xac3   : > { %v2360_v62 = vpop.f32.mrf.mxu1  ;;  %1949 = sbr.rel (%p2154_p5) target bundleno = 2926 (0xb6e), region = 92 }
 0xac4   : > { %1945 = vst.msk [vmem:[#allocation2] sm:$0xff] %vm643_vm1, %v1944_v61 }
 0xac5   : > { %v1941_v63 = vpop.f32.mrf.mxu1 }
 0xac7   : > { %v2361_v0 = vpop.f32.mrf.mxu1 }
 0xac8   : > { %v1952_v1 = vmul.f32 %v1944_v61, %v1944_v61  ;;  %v1950_v8 = vld [vmem:[%s2923_s16] sm:$0x1]  ;;  %vm1966_vm8 = vcmask 519168  }
 0xac9   : > { %v1951_v9 = vunpack.c.l.bf16 %v1950_v8 }
 0xaca   : > { %v1953_v3 = vsel %vm643_vm1, %v1952_v1, 0.0 }
 0xacb   : > { %1954 = vadd.xlane.f32.xlu0 %v1953_v3  ;;  %v1963_v10 = vrot.slane %v1951_v9, %v2680_v24 }
 0xb54   : > { %v1955_v4 = vpop.xlane.xlu0 %1954 }
 0xb55   : > { %v1956_v5 = vmul.f32 0.015625, %v1955_v4 }
 0xb57   : > { %v1957_v7 = vadd.f32 1e-05, %v1956_v5 }
 0xb59   : > { %2434 = vrsqrt.f32 %v1957_v7 }
 0xb66   : > { %v2435_v11 = vpop.eup %2434 }
 0xb67   : > { %v1959_v12 = vmul.f32 %v2435_v11, %v1944_v61 }
 0xb69   : > { %v1964_v13 = vmul.f32 %v1963_v10, %v1959_v12 }
 0xb6b   : > { %v1965_v14 = vpack.c.bf16 %v1964_v13, %v1964_v13 }
 0xb6d   : > { %1967 = vst.msk [vmem:[#allocation3] sm:$0xf] %vm1966_vm8, %v1965_v14 }
 0xb6e PF: > { %p2155_p6 = scmp.ge.s32.totalorder %s2573_s22, 1 }
 0xb70   : > { %1971 = sbr.rel (%p2155_p6) target bundleno = 2936 (0xb78), region = 96 }
 0xb75   : > { %v1972_v15 = vpack.c.bf16 %v1944_v61, %v1944_v61  ;;  %vm1973_vm9 = vcmask 519168  }
 0xb77   : > { %1974 = vst.msk [vmem:[#allocation3] sm:$0xf] %vm1973_vm9, %v1972_v15 }
 0xb78 PF: > { %p2366_p7 = scmp.eq.s32.totalorder %s2573_s22, 1  ;;  %s2481_s23 = smov [#allocation3]  }
 0xb79   : > { %s1982_s19 = sshll.u32 %s2481_s23, 4  ;;  %s1983_s19 = int_to_ptr.vmem [resolvable:$true] %s1982_s19 }
 0xb7a   : > { %s2436_s26 = scalar_lea.vmem %s1983_s19, 64  ;;  %p2443_p11 = scmp.lt.s32.totalorder %s1983_s19, %s1983_s19 }
 0xb7b   : > { %p2437_p8 = scmp.ne.s32.totalorder %s1983_s19, %s2436_s26  ;;  %p2444_p12 = scmp.lt.s32.totalorder %s2436_s26, %s2436_s26 }
 0xb7d   : > { %p2438_p9 = pnand %p2437_p8, %p2366_p7  ;;  %p2445_p13 = por %p2444_p12, %p2443_p11 }
 0xb7f   : > { %p2439_p10 = pneg %p2438_p9 }
 0xb81   : > { %p2446_p0 = pnand %p2445_p13, %p2439_p10 }
 0xb83   : > { %2449 = shalt.err (!%p2446_p0)
}
 0xb84   : > { %s2924_s28 = sld [smem:[#allocation11_spill]] }
 0xb8a   : > { %2363 = dma.vmem_to_hbm [thread:$0]  (%p2366_p7), %s1983_s19, 64, %s2924_s28, [#allocation4]  }
 0xb8b   : > { %2465 = dma.done.wait (%p2366_p7), [#allocation4], 64  }
 0xb8c   : > { %2467 = vsyncadd (%p2366_p7), [#allocation4], 4294967232 }
 0xb8d PF: > { %s2925_s29 = sld [smem:[#allocation6_spill]] }
 0xb93   : > { %s27_s21 = sadd.s32 1, %s2925_s29  }
 0xb94   : > { %p24_p1 = scmp.ge.s32.totalorder %s27_s21, 4  }
 0xb96   :  { %26 = sbr.rel (!%p24_p1) target bundleno = 7 (0x7), region = 144 }
 0xb9b   :  { %1995 = vsyncpa [#allocation4], 1 }
 0xb9c   :  { %1997 = vsyncpa [#allocation4 + $0x1], 1 }

</bundles_post_ra>
